<compile_context>
chip_gen: v5e
topology: v5e:2x2
jax: 0.10.0
libtpu: 0.0.40
codegen_flags: <defaults>
</compile_context>

<pallas_src>
import numpy as np

import jax
import jax.numpy as jnp
from jax import lax
from jax.experimental import pallas as pl
from jax.experimental.pallas import tpu as pltpu

EPS = 1e-5
OUT_H, OUT_W = 19, 19


# ----------------------------------------------------------------------------
# Host-side (numpy, trace-time) helpers: PyTorch-equivalent bilinear matrices.
# ----------------------------------------------------------------------------
def _bilinear_matrix_np(in_size, out_size):
    # align_corners=False: src = (dst + 0.5) * in/out - 0.5, clamped at 0,
    # upper neighbor clamped at in_size - 1 (weights accumulate on the clamp).
    scale = in_size / out_size
    dst = np.arange(out_size, dtype=np.float64)
    src = np.maximum((dst + 0.5) * scale - 0.5, 0.0)
    i0 = np.minimum(np.floor(src).astype(np.int64), in_size - 1)
    i1 = np.minimum(i0 + 1, in_size - 1)
    l1 = src - i0
    l0 = 1.0 - l1
    mat = np.zeros((out_size, in_size), dtype=np.float64)
    mat[np.arange(out_size), i0] += l0
    mat[np.arange(out_size), i1] += l1
    return mat


def _fused_resize_matrix_np(h, w):
    wy = _bilinear_matrix_np(h, OUT_H)          # (19, H)
    wx = _bilinear_matrix_np(w, OUT_W)          # (19, W)
    # M[h*W + w, oy*19 + ox] = Wy[oy, h] * Wx[ox, w]
    return np.kron(wy, wx).T.astype(np.float32)  # (H*W, 361)


# ----------------------------------------------------------------------------
# One fused kernel: 3x (train-mode BN -> relu -> 1x1 conv) + skip + resize.
# x_ref: (N, C, H*W) lane-dense slab, fully resident in VMEM.
# ----------------------------------------------------------------------------
def fused_resblock_resize_kernel(x_ref, w_ref, b_ref, g_ref, be_ref, m_ref,
                                 o_ref):
    n_img, n_ch, n_sp = x_ref.shape
    x = x_ref[...].astype(jnp.float32)          # (N, C, S)
    w = w_ref[...].astype(jnp.float32)          # (C_out, C_in)
    b = b_ref[...].astype(jnp.float32)          # (1, C, 1)
    g = g_ref[...].astype(jnp.float32)          # (1, C, 1)
    be = be_ref[...].astype(jnp.float32)        # (1, C, 1)
    inv_cnt = 1.0 / float(n_img * n_sp)

    def bn_relu(z):
        # BatchNorm2d train mode: per-channel biased stats over (N, H, W).
        s = jnp.sum(z, axis=2, keepdims=True)                 # (N, C, 1)
        mean = jnp.sum(s, axis=0, keepdims=True) * inv_cnt    # (1, C, 1)
        d = z - mean
        sq = jnp.sum(d * d, axis=2, keepdims=True)            # (N, C, 1)
        var = jnp.sum(sq, axis=0, keepdims=True) * inv_cnt    # (1, C, 1)
        zn = d * lax.rsqrt(var + EPS) * g + be
        return jnp.maximum(zn, 0.0)

    def conv1x1(z):
        # out[n, o, s] = bias[o] + sum_ci w[o, ci] * z[n, ci, s]
        # Unrolled VPU broadcast-FMAs (C is tiny); avoids padded MXU matmuls.
        acc = w[None, :, 0:1] * z[:, 0:1, :]
        for ci in range(1, n_ch):
            acc = acc + w[None, :, ci:ci + 1] * z[:, ci:ci + 1, :]
        return acc + b

    h = x
    for _ in range(3):
        h = conv1x1(bn_relu(h))
    r = h + x                                    # residual skip

    # Bilinear resize: one lane-dense matmul per image against the fused
    # kron(Wy, Wx)^T operator; output last dim = 361 (>=128, single wide store).
    m = m_ref[...].astype(jnp.float32)           # (S, 361)
    for n in range(n_img):
        o_ref[n] = jnp.dot(r[n], m,
                           preferred_element_type=jnp.float32
                           ).astype(o_ref.dtype)


@jax.jit
def mask_branch_forward(x_nchw, conv_w, conv_b, bn_gamma, bn_beta):
    N, C, H, W = x_nchw.shape
    S = H * W
    x3 = x_nchw.reshape(N, C, S)                 # free bitcast, no transpose
    w2 = conv_w.reshape(C, C)                    # (C_out, C_in)
    b3 = conv_b.reshape(1, C, 1)
    g3 = bn_gamma.reshape(1, C, 1)
    be3 = bn_beta.reshape(1, C, 1)
    m = jnp.asarray(_fused_resize_matrix_np(H, W))   # baked constant (S, 361)

    out3 = pl.pallas_call(
        fused_resblock_resize_kernel,
        out_shape=jax.ShapeDtypeStruct((N, C, OUT_H * OUT_W), x_nchw.dtype),
        grid=(1,),
        in_specs=[
            pl.BlockSpec((N, C, S), lambda i: (0, 0, 0)),
            pl.BlockSpec((C, C), lambda i: (0, 0)),
            pl.BlockSpec((1, C, 1), lambda i: (0, 0, 0)),
            pl.BlockSpec((1, C, 1), lambda i: (0, 0, 0)),
            pl.BlockSpec((1, C, 1), lambda i: (0, 0, 0)),
            pl.BlockSpec((S, OUT_H * OUT_W), lambda i: (0, 0)),
        ],
        out_specs=pl.BlockSpec((N, C, OUT_H * OUT_W), lambda i: (0, 0, 0)),
        compiler_params=pltpu.CompilerParams(
            dimension_semantics=("arbitrary",)),
    )(x3, w2, b3, g3, be3, m)

    return out3.reshape(N, C, OUT_H, OUT_W)      # free bitcast


# ----------------------------------------------------------------------------
# Pure-JAX reference (NCHW) for a correctness sanity check.
# ----------------------------------------------------------------------------
def _reference_forward(x, conv_w, conv_b, gamma, beta):
    N, C, H, W = x.shape
    g = gamma.reshape(1, C, 1, 1)
    be = beta.reshape(1, C, 1, 1)
    b = conv_b.reshape(1, C, 1, 1)
    w = conv_w.reshape(C, C)

    def bn_relu(z):
        mean = jnp.mean(z, axis=(0, 2, 3), keepdims=True)
        var = jnp.mean((z - mean) ** 2, axis=(0, 2, 3), keepdims=True)
        return jnp.maximum((z - mean) * lax.rsqrt(var + EPS) * g + be, 0.0)

    def conv(z):
        return jnp.einsum("oc,nchw->nohw", w, z) + b

    h = x
    for _ in range(3):
        h = conv(bn_relu(h))
    r = h + x
    wy = jnp.asarray(_bilinear_matrix_np(H, OUT_H), dtype=jnp.float32)
    wx = jnp.asarray(_bilinear_matrix_np(W, OUT_W), dtype=jnp.float32)
    return jnp.einsum("yh,nchw,xw->ncyx", wy, r, wx)


if __name__ == "__main__":
    N, C, H, W = 2, 4, 16, 16
    key = jax.random.PRNGKey(0)
    kx, kw, kb, kg, kbe = jax.random.split(key, 5)

    x = jax.random.normal(kx, (N, C, H, W), dtype=jnp.float32)
    # Synthetic parameters (shapes match nn.Conv2d(C, C, 1) / nn.BatchNorm2d(C))
    conv_w = 0.1 * jax.random.normal(kw, (C, C, 1, 1), dtype=jnp.float32)
    conv_b = 0.1 * jax.random.normal(kb, (C,), dtype=jnp.float32)
    bn_gamma = 1.0 + 0.1 * jax.random.normal(kg, (C,), dtype=jnp.float32)
    bn_beta = 0.1 * jax.random.normal(kbe, (C,), dtype=jnp.float32)

    out = mask_branch_forward(x, conv_w, conv_b, bn_gamma, bn_beta)
    out = jax.block_until_ready(out)
    assert out.shape == (N, C, OUT_H, OUT_W)
    assert bool(jnp.all(jnp.isfinite(out)))

    ref = _reference_forward(x, conv_w, conv_b, bn_gamma, bn_beta)
    err = float(jnp.max(jnp.abs(out - ref)))
    assert err < 5e-3, f"max abs error vs reference: {err}"
    print("KERNEL_OK")
</pallas_src>

<mosaic_0001>
module attributes {stable_mosaic.version = 11 : i64} {
  func.func @fused_resblock_resize_kernel(%arg0: i32, %arg1: memref<2x4x256xf32, #tpu.memory_space<vmem>>, %arg2: memref<4x4xf32, #tpu.memory_space<vmem>>, %arg3: memref<1x4x1xf32, #tpu.memory_space<vmem>>, %arg4: memref<1x4x1xf32, #tpu.memory_space<vmem>>, %arg5: memref<1x4x1xf32, #tpu.memory_space<vmem>>, %arg6: memref<256x361xf32, #tpu.memory_space<vmem>>, %arg7: memref<2x4x361xf32, #tpu.memory_space<vmem>>) attributes {dimension_semantics = [#tpu.dimension_semantics<arbitrary>], iteration_bounds = array<i64: 1>, scalar_prefetch = 0 : i64, scratch_operands = 0 : i64, tpu.core_type = #tpu.core_type<tc>, window_params = [{pipeline_mode = #tpu.pipeline_mode<synchronous>, transform_indices = @transform_0, window_bounds = array<i64: 2, 4, 256>}, {pipeline_mode = #tpu.pipeline_mode<synchronous>, transform_indices = @transform_1, window_bounds = array<i64: 4, 4>}, {pipeline_mode = #tpu.pipeline_mode<synchronous>, transform_indices = @transform_2, window_bounds = array<i64: 1, 4, 1>}, {pipeline_mode = #tpu.pipeline_mode<synchronous>, transform_indices = @transform_3, window_bounds = array<i64: 1, 4, 1>}, {pipeline_mode = #tpu.pipeline_mode<synchronous>, transform_indices = @transform_4, window_bounds = array<i64: 1, 4, 1>}, {pipeline_mode = #tpu.pipeline_mode<synchronous>, transform_indices = @transform_5, window_bounds = array<i64: 256, 361>}, {pipeline_mode = #tpu.pipeline_mode<synchronous>, transform_indices = @transform_6, window_bounds = array<i64: 2, 4, 361>}]} {
    %c0 = arith.constant 0 : index
    %c0_0 = arith.constant 0 : index
    %c0_1 = arith.constant 0 : index
    %0 = vector.load %arg1[%c0, %c0_0, %c0_1] : memref<2x4x256xf32, #tpu.memory_space<vmem>>, vector<2x4x256xf32>
    %c0_2 = arith.constant 0 : index
    %c0_3 = arith.constant 0 : index
    %1 = vector.load %arg2[%c0_2, %c0_3] : memref<4x4xf32, #tpu.memory_space<vmem>>, vector<4x4xf32>
    %c0_4 = arith.constant 0 : index
    %c0_5 = arith.constant 0 : index
    %c0_6 = arith.constant 0 : index
    %2 = vector.load %arg3[%c0_4, %c0_5, %c0_6] : memref<1x4x1xf32, #tpu.memory_space<vmem>>, vector<1x4x1xf32>
    %c0_7 = arith.constant 0 : index
    %c0_8 = arith.constant 0 : index
    %c0_9 = arith.constant 0 : index
    %3 = vector.load %arg4[%c0_7, %c0_8, %c0_9] : memref<1x4x1xf32, #tpu.memory_space<vmem>>, vector<1x4x1xf32>
    %c0_10 = arith.constant 0 : index
    %c0_11 = arith.constant 0 : index
    %c0_12 = arith.constant 0 : index
    %4 = vector.load %arg5[%c0_10, %c0_11, %c0_12] : memref<1x4x1xf32, #tpu.memory_space<vmem>>, vector<1x4x1xf32>
    %cst = arith.constant dense<0.000000e+00> : vector<2x4xf32>
    %5 = vector.multi_reduction <add>, %0, %cst [2] : vector<2x4x256xf32> to vector<2x4xf32>
    %6 = vector.shape_cast %5 : vector<2x4xf32> to vector<2x4x1xf32>
    %cst_13 = arith.constant dense<0.000000e+00> : vector<4x1xf32>
    %7 = vector.multi_reduction <add>, %6, %cst_13 [0] : vector<2x4x1xf32> to vector<4x1xf32>
    %8 = vector.shape_cast %7 : vector<4x1xf32> to vector<1x4x1xf32>
    %cst_14 = arith.constant 0.001953125 : f32
    %9 = vector.broadcast %cst_14 : f32 to vector<1x4x1xf32>
    %10 = arith.mulf %8, %9 : vector<1x4x1xf32>
    %11 = vector.broadcast %10 : vector<1x4x1xf32> to vector<2x4x256xf32>
    %12 = arith.subf %0, %11 : vector<2x4x256xf32>
    %13 = arith.mulf %12, %12 : vector<2x4x256xf32>
    %cst_15 = arith.constant dense<0.000000e+00> : vector<2x4xf32>
    %14 = vector.multi_reduction <add>, %13, %cst_15 [2] : vector<2x4x256xf32> to vector<2x4xf32>
    %15 = vector.shape_cast %14 : vector<2x4xf32> to vector<2x4x1xf32>
    %cst_16 = arith.constant dense<0.000000e+00> : vector<4x1xf32>
    %16 = vector.multi_reduction <add>, %15, %cst_16 [0] : vector<2x4x1xf32> to vector<4x1xf32>
    %17 = vector.shape_cast %16 : vector<4x1xf32> to vector<1x4x1xf32>
    %cst_17 = arith.constant 0.001953125 : f32
    %18 = vector.broadcast %cst_17 : f32 to vector<1x4x1xf32>
    %19 = arith.mulf %17, %18 : vector<1x4x1xf32>
    %cst_18 = arith.constant 9.99999974E-6 : f32
    %20 = vector.broadcast %cst_18 : f32 to vector<1x4x1xf32>
    %21 = arith.addf %19, %20 : vector<1x4x1xf32>
    %22 = math.rsqrt %21 : vector<1x4x1xf32>
    %23 = vector.broadcast %22 : vector<1x4x1xf32> to vector<2x4x256xf32>
    %24 = arith.mulf %12, %23 : vector<2x4x256xf32>
    %25 = vector.broadcast %3 : vector<1x4x1xf32> to vector<2x4x256xf32>
    %26 = arith.mulf %24, %25 : vector<2x4x256xf32>
    %27 = vector.broadcast %4 : vector<1x4x1xf32> to vector<2x4x256xf32>
    %28 = arith.addf %26, %27 : vector<2x4x256xf32>
    %cst_19 = arith.constant 0.000000e+00 : f32
    %29 = vector.broadcast %cst_19 : f32 to vector<2x4x256xf32>
    %30 = arith.maximumf %28, %29 : vector<2x4x256xf32>
    %31 = vector.extract_strided_slice %1 {offsets = [0, 0], sizes = [4, 1], strides = [1, 1]} : vector<4x4xf32> to vector<4x1xf32>
    %32 = vector.shape_cast %31 : vector<4x1xf32> to vector<1x4x1xf32>
    %33 = vector.extract_strided_slice %30 {offsets = [0, 0, 0], sizes = [2, 1, 256], strides = [1, 1, 1]} : vector<2x4x256xf32> to vector<2x1x256xf32>
    %34 = vector.broadcast %32 : vector<1x4x1xf32> to vector<2x4x256xf32>
    %35 = vector.broadcast %33 : vector<2x1x256xf32> to vector<2x4x256xf32>
    %36 = arith.mulf %34, %35 : vector<2x4x256xf32>
    %37 = vector.extract_strided_slice %1 {offsets = [0, 1], sizes = [4, 1], strides = [1, 1]} : vector<4x4xf32> to vector<4x1xf32>
    %38 = vector.shape_cast %37 : vector<4x1xf32> to vector<1x4x1xf32>
    %39 = vector.extract_strided_slice %30 {offsets = [0, 1, 0], sizes = [2, 1, 256], strides = [1, 1, 1]} : vector<2x4x256xf32> to vector<2x1x256xf32>
    %40 = vector.broadcast %38 : vector<1x4x1xf32> to vector<2x4x256xf32>
    %41 = vector.broadcast %39 : vector<2x1x256xf32> to vector<2x4x256xf32>
    %42 = arith.mulf %40, %41 : vector<2x4x256xf32>
    %43 = arith.addf %36, %42 : vector<2x4x256xf32>
    %44 = vector.extract_strided_slice %1 {offsets = [0, 2], sizes = [4, 1], strides = [1, 1]} : vector<4x4xf32> to vector<4x1xf32>
    %45 = vector.shape_cast %44 : vector<4x1xf32> to vector<1x4x1xf32>
    %46 = vector.extract_strided_slice %30 {offsets = [0, 2, 0], sizes = [2, 1, 256], strides = [1, 1, 1]} : vector<2x4x256xf32> to vector<2x1x256xf32>
    %47 = vector.broadcast %45 : vector<1x4x1xf32> to vector<2x4x256xf32>
    %48 = vector.broadcast %46 : vector<2x1x256xf32> to vector<2x4x256xf32>
    %49 = arith.mulf %47, %48 : vector<2x4x256xf32>
    %50 = arith.addf %43, %49 : vector<2x4x256xf32>
    %51 = vector.extract_strided_slice %1 {offsets = [0, 3], sizes = [4, 1], strides = [1, 1]} : vector<4x4xf32> to vector<4x1xf32>
    %52 = vector.shape_cast %51 : vector<4x1xf32> to vector<1x4x1xf32>
    %53 = vector.extract_strided_slice %30 {offsets = [0, 3, 0], sizes = [2, 1, 256], strides = [1, 1, 1]} : vector<2x4x256xf32> to vector<2x1x256xf32>
    %54 = vector.broadcast %52 : vector<1x4x1xf32> to vector<2x4x256xf32>
    %55 = vector.broadcast %53 : vector<2x1x256xf32> to vector<2x4x256xf32>
    %56 = arith.mulf %54, %55 : vector<2x4x256xf32>
    %57 = arith.addf %50, %56 : vector<2x4x256xf32>
    %58 = vector.broadcast %2 : vector<1x4x1xf32> to vector<2x4x256xf32>
    %59 = arith.addf %57, %58 : vector<2x4x256xf32>
    %cst_20 = arith.constant dense<0.000000e+00> : vector<2x4xf32>
    %60 = vector.multi_reduction <add>, %59, %cst_20 [2] : vector<2x4x256xf32> to vector<2x4xf32>
    %61 = vector.shape_cast %60 : vector<2x4xf32> to vector<2x4x1xf32>
    %cst_21 = arith.constant dense<0.000000e+00> : vector<4x1xf32>
    %62 = vector.multi_reduction <add>, %61, %cst_21 [0] : vector<2x4x1xf32> to vector<4x1xf32>
    %63 = vector.shape_cast %62 : vector<4x1xf32> to vector<1x4x1xf32>
    %cst_22 = arith.constant 0.001953125 : f32
    %64 = vector.broadcast %cst_22 : f32 to vector<1x4x1xf32>
    %65 = arith.mulf %63, %64 : vector<1x4x1xf32>
    %66 = vector.broadcast %65 : vector<1x4x1xf32> to vector<2x4x256xf32>
    %67 = arith.subf %59, %66 : vector<2x4x256xf32>
    %68 = arith.mulf %67, %67 : vector<2x4x256xf32>
    %cst_23 = arith.constant dense<0.000000e+00> : vector<2x4xf32>
    %69 = vector.multi_reduction <add>, %68, %cst_23 [2] : vector<2x4x256xf32> to vector<2x4xf32>
    %70 = vector.shape_cast %69 : vector<2x4xf32> to vector<2x4x1xf32>
    %cst_24 = arith.constant dense<0.000000e+00> : vector<4x1xf32>
    %71 = vector.multi_reduction <add>, %70, %cst_24 [0] : vector<2x4x1xf32> to vector<4x1xf32>
    %72 = vector.shape_cast %71 : vector<4x1xf32> to vector<1x4x1xf32>
    %cst_25 = arith.constant 0.001953125 : f32
    %73 = vector.broadcast %cst_25 : f32 to vector<1x4x1xf32>
    %74 = arith.mulf %72, %73 : vector<1x4x1xf32>
    %cst_26 = arith.constant 9.99999974E-6 : f32
    %75 = vector.broadcast %cst_26 : f32 to vector<1x4x1xf32>
    %76 = arith.addf %74, %75 : vector<1x4x1xf32>
    %77 = math.rsqrt %76 : vector<1x4x1xf32>
    %78 = vector.broadcast %77 : vector<1x4x1xf32> to vector<2x4x256xf32>
    %79 = arith.mulf %67, %78 : vector<2x4x256xf32>
    %80 = vector.broadcast %3 : vector<1x4x1xf32> to vector<2x4x256xf32>
    %81 = arith.mulf %79, %80 : vector<2x4x256xf32>
    %82 = vector.broadcast %4 : vector<1x4x1xf32> to vector<2x4x256xf32>
    %83 = arith.addf %81, %82 : vector<2x4x256xf32>
    %cst_27 = arith.constant 0.000000e+00 : f32
    %84 = vector.broadcast %cst_27 : f32 to vector<2x4x256xf32>
    %85 = arith.maximumf %83, %84 : vector<2x4x256xf32>
    %86 = vector.extract_strided_slice %1 {offsets = [0, 0], sizes = [4, 1], strides = [1, 1]} : vector<4x4xf32> to vector<4x1xf32>
    %87 = vector.shape_cast %86 : vector<4x1xf32> to vector<1x4x1xf32>
    %88 = vector.extract_strided_slice %85 {offsets = [0, 0, 0], sizes = [2, 1, 256], strides = [1, 1, 1]} : vector<2x4x256xf32> to vector<2x1x256xf32>
    %89 = vector.broadcast %87 : vector<1x4x1xf32> to vector<2x4x256xf32>
    %90 = vector.broadcast %88 : vector<2x1x256xf32> to vector<2x4x256xf32>
    %91 = arith.mulf %89, %90 : vector<2x4x256xf32>
    %92 = vector.extract_strided_slice %1 {offsets = [0, 1], sizes = [4, 1], strides = [1, 1]} : vector<4x4xf32> to vector<4x1xf32>
    %93 = vector.shape_cast %92 : vector<4x1xf32> to vector<1x4x1xf32>
    %94 = vector.extract_strided_slice %85 {offsets = [0, 1, 0], sizes = [2, 1, 256], strides = [1, 1, 1]} : vector<2x4x256xf32> to vector<2x1x256xf32>
    %95 = vector.broadcast %93 : vector<1x4x1xf32> to vector<2x4x256xf32>
    %96 = vector.broadcast %94 : vector<2x1x256xf32> to vector<2x4x256xf32>
    %97 = arith.mulf %95, %96 : vector<2x4x256xf32>
    %98 = arith.addf %91, %97 : vector<2x4x256xf32>
    %99 = vector.extract_strided_slice %1 {offsets = [0, 2], sizes = [4, 1], strides = [1, 1]} : vector<4x4xf32> to vector<4x1xf32>
    %100 = vector.shape_cast %99 : vector<4x1xf32> to vector<1x4x1xf32>
    %101 = vector.extract_strided_slice %85 {offsets = [0, 2, 0], sizes = [2, 1, 256], strides = [1, 1, 1]} : vector<2x4x256xf32> to vector<2x1x256xf32>
    %102 = vector.broadcast %100 : vector<1x4x1xf32> to vector<2x4x256xf32>
    %103 = vector.broadcast %101 : vector<2x1x256xf32> to vector<2x4x256xf32>
    %104 = arith.mulf %102, %103 : vector<2x4x256xf32>
    %105 = arith.addf %98, %104 : vector<2x4x256xf32>
    %106 = vector.extract_strided_slice %1 {offsets = [0, 3], sizes = [4, 1], strides = [1, 1]} : vector<4x4xf32> to vector<4x1xf32>
    %107 = vector.shape_cast %106 : vector<4x1xf32> to vector<1x4x1xf32>
    %108 = vector.extract_strided_slice %85 {offsets = [0, 3, 0], sizes = [2, 1, 256], strides = [1, 1, 1]} : vector<2x4x256xf32> to vector<2x1x256xf32>
    %109 = vector.broadcast %107 : vector<1x4x1xf32> to vector<2x4x256xf32>
    %110 = vector.broadcast %108 : vector<2x1x256xf32> to vector<2x4x256xf32>
    %111 = arith.mulf %109, %110 : vector<2x4x256xf32>
    %112 = arith.addf %105, %111 : vector<2x4x256xf32>
    %113 = vector.broadcast %2 : vector<1x4x1xf32> to vector<2x4x256xf32>
    %114 = arith.addf %112, %113 : vector<2x4x256xf32>
    %cst_28 = arith.constant dense<0.000000e+00> : vector<2x4xf32>
    %115 = vector.multi_reduction <add>, %114, %cst_28 [2] : vector<2x4x256xf32> to vector<2x4xf32>
    %116 = vector.shape_cast %115 : vector<2x4xf32> to vector<2x4x1xf32>
    %cst_29 = arith.constant dense<0.000000e+00> : vector<4x1xf32>
    %117 = vector.multi_reduction <add>, %116, %cst_29 [0] : vector<2x4x1xf32> to vector<4x1xf32>
    %118 = vector.shape_cast %117 : vector<4x1xf32> to vector<1x4x1xf32>
    %cst_30 = arith.constant 0.001953125 : f32
    %119 = vector.broadcast %cst_30 : f32 to vector<1x4x1xf32>
    %120 = arith.mulf %118, %119 : vector<1x4x1xf32>
    %121 = vector.broadcast %120 : vector<1x4x1xf32> to vector<2x4x256xf32>
    %122 = arith.subf %114, %121 : vector<2x4x256xf32>
    %123 = arith.mulf %122, %122 : vector<2x4x256xf32>
    %cst_31 = arith.constant dense<0.000000e+00> : vector<2x4xf32>
    %124 = vector.multi_reduction <add>, %123, %cst_31 [2] : vector<2x4x256xf32> to vector<2x4xf32>
    %125 = vector.shape_cast %124 : vector<2x4xf32> to vector<2x4x1xf32>
    %cst_32 = arith.constant dense<0.000000e+00> : vector<4x1xf32>
    %126 = vector.multi_reduction <add>, %125, %cst_32 [0] : vector<2x4x1xf32> to vector<4x1xf32>
    %127 = vector.shape_cast %126 : vector<4x1xf32> to vector<1x4x1xf32>
    %cst_33 = arith.constant 0.001953125 : f32
    %128 = vector.broadcast %cst_33 : f32 to vector<1x4x1xf32>
    %129 = arith.mulf %127, %128 : vector<1x4x1xf32>
    %cst_34 = arith.constant 9.99999974E-6 : f32
    %130 = vector.broadcast %cst_34 : f32 to vector<1x4x1xf32>
    %131 = arith.addf %129, %130 : vector<1x4x1xf32>
    %132 = math.rsqrt %131 : vector<1x4x1xf32>
    %133 = vector.broadcast %132 : vector<1x4x1xf32> to vector<2x4x256xf32>
    %134 = arith.mulf %122, %133 : vector<2x4x256xf32>
    %135 = vector.broadcast %3 : vector<1x4x1xf32> to vector<2x4x256xf32>
    %136 = arith.mulf %134, %135 : vector<2x4x256xf32>
    %137 = vector.broadcast %4 : vector<1x4x1xf32> to vector<2x4x256xf32>
    %138 = arith.addf %136, %137 : vector<2x4x256xf32>
    %cst_35 = arith.constant 0.000000e+00 : f32
    %139 = vector.broadcast %cst_35 : f32 to vector<2x4x256xf32>
    %140 = arith.maximumf %138, %139 : vector<2x4x256xf32>
    %141 = vector.extract_strided_slice %1 {offsets = [0, 0], sizes = [4, 1], strides = [1, 1]} : vector<4x4xf32> to vector<4x1xf32>
    %142 = vector.shape_cast %141 : vector<4x1xf32> to vector<1x4x1xf32>
    %143 = vector.extract_strided_slice %140 {offsets = [0, 0, 0], sizes = [2, 1, 256], strides = [1, 1, 1]} : vector<2x4x256xf32> to vector<2x1x256xf32>
    %144 = vector.broadcast %142 : vector<1x4x1xf32> to vector<2x4x256xf32>
    %145 = vector.broadcast %143 : vector<2x1x256xf32> to vector<2x4x256xf32>
    %146 = arith.mulf %144, %145 : vector<2x4x256xf32>
    %147 = vector.extract_strided_slice %1 {offsets = [0, 1], sizes = [4, 1], strides = [1, 1]} : vector<4x4xf32> to vector<4x1xf32>
    %148 = vector.shape_cast %147 : vector<4x1xf32> to vector<1x4x1xf32>
    %149 = vector.extract_strided_slice %140 {offsets = [0, 1, 0], sizes = [2, 1, 256], strides = [1, 1, 1]} : vector<2x4x256xf32> to vector<2x1x256xf32>
    %150 = vector.broadcast %148 : vector<1x4x1xf32> to vector<2x4x256xf32>
    %151 = vector.broadcast %149 : vector<2x1x256xf32> to vector<2x4x256xf32>
    %152 = arith.mulf %150, %151 : vector<2x4x256xf32>
    %153 = arith.addf %146, %152 : vector<2x4x256xf32>
    %154 = vector.extract_strided_slice %1 {offsets = [0, 2], sizes = [4, 1], strides = [1, 1]} : vector<4x4xf32> to vector<4x1xf32>
    %155 = vector.shape_cast %154 : vector<4x1xf32> to vector<1x4x1xf32>
    %156 = vector.extract_strided_slice %140 {offsets = [0, 2, 0], sizes = [2, 1, 256], strides = [1, 1, 1]} : vector<2x4x256xf32> to vector<2x1x256xf32>
    %157 = vector.broadcast %155 : vector<1x4x1xf32> to vector<2x4x256xf32>
    %158 = vector.broadcast %156 : vector<2x1x256xf32> to vector<2x4x256xf32>
    %159 = arith.mulf %157, %158 : vector<2x4x256xf32>
    %160 = arith.addf %153, %159 : vector<2x4x256xf32>
    %161 = vector.extract_strided_slice %1 {offsets = [0, 3], sizes = [4, 1], strides = [1, 1]} : vector<4x4xf32> to vector<4x1xf32>
    %162 = vector.shape_cast %161 : vector<4x1xf32> to vector<1x4x1xf32>
    %163 = vector.extract_strided_slice %140 {offsets = [0, 3, 0], sizes = [2, 1, 256], strides = [1, 1, 1]} : vector<2x4x256xf32> to vector<2x1x256xf32>
    %164 = vector.broadcast %162 : vector<1x4x1xf32> to vector<2x4x256xf32>
    %165 = vector.broadcast %163 : vector<2x1x256xf32> to vector<2x4x256xf32>
    %166 = arith.mulf %164, %165 : vector<2x4x256xf32>
    %167 = arith.addf %160, %166 : vector<2x4x256xf32>
    %168 = vector.broadcast %2 : vector<1x4x1xf32> to vector<2x4x256xf32>
    %169 = arith.addf %167, %168 : vector<2x4x256xf32>
    %170 = arith.addf %169, %0 : vector<2x4x256xf32>
    %c0_36 = arith.constant 0 : index
    %c0_37 = arith.constant 0 : index
    %171 = vector.load %arg6[%c0_36, %c0_37] : memref<256x361xf32, #tpu.memory_space<vmem>>, vector<256x361xf32>
    %172 = vector.extract_strided_slice %170 {offsets = [0, 0, 0], sizes = [1, 4, 256], strides = [1, 1, 1]} : vector<2x4x256xf32> to vector<1x4x256xf32>
    %173 = vector.shape_cast %172 : vector<1x4x256xf32> to vector<4x256xf32>
    %cst_38 = arith.constant dense<0.000000e+00> : vector<4x361xf32>
    %174 = tpu.matmul %173, %171, %cst_38 {dimension_numbers = #tpu.dot_dimension_numbers<[1], [0], [0], [1], [0, 0, 1, 1], [], []>} : vector<4x256xf32>, vector<256x361xf32>, vector<4x361xf32> -> vector<4x361xf32>
    %c0_39 = arith.constant 0 : index
    %c0_40 = arith.constant 0 : index
    %c0_41 = arith.constant 0 : index
    %175 = vector.load %arg7[%c0_39, %c0_40, %c0_41] : memref<2x4x361xf32, #tpu.memory_space<vmem>>, vector<1x4x361xf32>
    %176 = vector.shape_cast %175 : vector<1x4x361xf32> to vector<4x361xf32>
    %177 = vector.shape_cast %174 : vector<4x361xf32> to vector<1x4x361xf32>
    tpu.vector_store %arg7[%c0_39, %c0_40, %c0_41], %177 {strides = array<i32>} : memref<2x4x361xf32, #tpu.memory_space<vmem>>, vector<1x4x361xf32>,
    %178 = vector.extract_strided_slice %170 {offsets = [1, 0, 0], sizes = [1, 4, 256], strides = [1, 1, 1]} : vector<2x4x256xf32> to vector<1x4x256xf32>
    %179 = vector.shape_cast %178 : vector<1x4x256xf32> to vector<4x256xf32>
    %cst_42 = arith.constant dense<0.000000e+00> : vector<4x361xf32>
    %180 = tpu.matmul %179, %171, %cst_42 {dimension_numbers = #tpu.dot_dimension_numbers<[1], [0], [0], [1], [0, 0, 1, 1], [], []>} : vector<4x256xf32>, vector<256x361xf32>, vector<4x361xf32> -> vector<4x361xf32>
    %c1 = arith.constant 1 : index
    %c0_43 = arith.constant 0 : index
    %c0_44 = arith.constant 0 : index
    %181 = vector.load %arg7[%c1, %c0_43, %c0_44] : memref<2x4x361xf32, #tpu.memory_space<vmem>>, vector<1x4x361xf32>
    %182 = vector.shape_cast %181 : vector<1x4x361xf32> to vector<4x361xf32>
    %183 = vector.shape_cast %180 : vector<4x361xf32> to vector<1x4x361xf32>
    tpu.vector_store %arg7[%c1, %c0_43, %c0_44], %183 {strides = array<i32>} : memref<2x4x361xf32, #tpu.memory_space<vmem>>, vector<1x4x361xf32>,
    return
  }
  func.func @transform_0(%arg0: i32) -> (i32, i32, i32) {
    %c0_i32 = arith.constant 0 : i32
    %c0_i32_0 = arith.constant 0 : i32
    %c0_i32_1 = arith.constant 0 : i32
    %c0_i32_2 = arith.constant 0 : i32
    return %c0_i32, %c0_i32_0, %c0_i32_1 : i32, i32, i32
  }
  func.func @transform_1(%arg0: i32) -> (i32, i32) {
    %c0_i32 = arith.constant 0 : i32
    %c0_i32_0 = arith.constant 0 : i32
    %c0_i32_1 = arith.constant 0 : i32
    return %c0_i32, %c0_i32_0 : i32, i32
  }
  func.func @transform_2(%arg0: i32) -> (i32, i32, i32) {
    %c0_i32 = arith.constant 0 : i32
    %c0_i32_0 = arith.constant 0 : i32
    %c0_i32_1 = arith.constant 0 : i32
    %c0_i32_2 = arith.constant 0 : i32
    return %c0_i32, %c0_i32_0, %c0_i32_1 : i32, i32, i32
  }
  func.func @transform_3(%arg0: i32) -> (i32, i32, i32) {
    %c0_i32 = arith.constant 0 : i32
    %c0_i32_0 = arith.constant 0 : i32
    %c0_i32_1 = arith.constant 0 : i32
    %c0_i32_2 = arith.constant 0 : i32
    return %c0_i32, %c0_i32_0, %c0_i32_1 : i32, i32, i32
  }
  func.func @transform_4(%arg0: i32) -> (i32, i32, i32) {
    %c0_i32 = arith.constant 0 : i32
    %c0_i32_0 = arith.constant 0 : i32
    %c0_i32_1 = arith.constant 0 : i32
    %c0_i32_2 = arith.constant 0 : i32
    return %c0_i32, %c0_i32_0, %c0_i32_1 : i32, i32, i32
  }
  func.func @transform_5(%arg0: i32) -> (i32, i32) {
    %c0_i32 = arith.constant 0 : i32
    %c0_i32_0 = arith.constant 0 : i32
    %c0_i32_1 = arith.constant 0 : i32
    return %c0_i32, %c0_i32_0 : i32, i32
  }
  func.func @transform_6(%arg0: i32) -> (i32, i32, i32) {
    %c0_i32 = arith.constant 0 : i32
    %c0_i32_0 = arith.constant 0 : i32
    %c0_i32_1 = arith.constant 0 : i32
    %c0_i32_2 = arith.constant 0 : i32
    return %c0_i32, %c0_i32_0, %c0_i32_1 : i32, i32, i32
  }
}

</mosaic_0001>

<bundles_post_ra>
// kernel: mask_branch_forward.1
= control target key start
LH: loop header
LB: loop body
LE: loop exit
PB: predicated region body
PF: predicated region fallthrough
CT: control target
= control target key end

     0   :  { %11 = vsyncpa [#allocation3], 0  ;;  %s901_s24 = smov [#allocation2]   ;;  %s902_s26 = smov 384   ;;  %s1535_s0 = inlined_call_operand.vmem [shape: f32[2,4,256], index: 0, kind: input, shape index: {}]   ;;  %s1536_s1 = inlined_call_operand.vmem [shape: f32[4,4], index: 1, kind: input, shape index: {}]   ;;  %s1537_s2 = inlined_call_operand.vmem [shape: f32[1,4,1], index: 2, kind: input, shape index: {}]   ;;  %s1538_s3 = inlined_call_operand.vmem [shape: f32[1,4,1], index: 3, kind: input, shape index: {}]   ;;  %s1539_s4 = inlined_call_operand.vmem [shape: f32[1,4,1], index: 4, kind: input, shape index: {}]   ;;  %s1540_s5 = inlined_call_operand.hbm [shape: f32[256,361], index: 5, kind: input, shape index: {}]   ;;  %s1541_s6 = inlined_call_operand.vmem [shape: f32[2,4,361], index: 6, kind: output, shape index: {}]  }
   0x1   :  { %s26_s23 = sshll.u32 %s1540_s5, 4  ;;  %s28_s25 = sshll.u32 %s901_s24, 4  ;;  %s27_s23 = int_to_ptr.hbm [resolvable:$true] %s26_s23  ;;  %s29_s25 = int_to_ptr.vmem [resolvable:$true] %s28_s25 }
   0x2   :  { %s903_s27 = smov 24  }
   0x3   :  { %34 = dma.hbm_to_vmem [thread:$0]  %s27_s23, 12288, %s29_s25, [#allocation3], %s902_s26, %s902_s26, %s903_s27  }
   0x4   :  { %899 = dma.done.wait [#allocation3], 12288  }
   0x5   :  { %900 = vsyncadd [#allocation3], 4294955008  ;;  %v39_v0 = vld [vmem:[%s1535_s0] sm:$0xff]  ;;  %v40_v1 = vld [vmem:[%s1535_s0 + $0x8] sm:$0xff]  ;;  %vm58_vm0 = vcmask 1043456   ;;  %v905_v17 = vmov 0  }
   0x6   :  { %47 = vst [vmem:[#allocation1] ss:$2 sm:$0xff] %v39_v0  ;;  %v904_v13 = vmov 839922192   ;;  %v43_v15 = vld [vmem:[%s1538_s3] sm:$0xf]  ;;  %863 = vset.pattern.permute.xlu2 %v905_v17  ;;  %864 = vset.pattern.permute.xlu0 %v905_v17 }
   0x7   :  { %51 = vst [vmem:[#allocation1 + $0x10] ss:$2 sm:$0xff] %v40_v1  ;;  %v75_v14 = vunpack.c.l.s4 %v904_v13  ;;  %v906_v18 = vmov 1   ;;  %v41_v19 = vld [vmem:[%s1536_s1] sm:$0xf]  ;;  %131 = vperm.xlu2 %863, %v43_v15   ;;  %v907_v38 = vmov 2  }
   0x8   :  { %865 = vset.pattern.permute.xlu1 %v906_v18  ;;  %v44_v26 = vld [vmem:[%s1539_s4] sm:$0xf]  ;;  %v908_v42 = vmov 3   ;;  %vm718_vm10 = vcmask 855040  }
   0x9   :  { %v965_v22 = vunpack.c.0.s8 %v75_v14  ;;  %v42_v43 = vld [vmem:[%s1537_s2] sm:$0xf] }
   0xd   :  { %v48_v2 = vld.sshfl [vmem:[#allocation1] sm:$0xff pattern:$0x75316420]  ;;  %v49_v3 = vld.sshfl [vmem:[#allocation1 + $0x8] sm:$0xff pattern:$0x75316420] }
   0xe   :  { %v59_v4 = vsel %vm58_vm0, %v48_v2, 0.0  ;;  %v60_v5 = vsel %vm58_vm0, %v49_v3, 0.0  ;;  %v52_v7 = vld.sshfl [vmem:[#allocation1 + $0x10] sm:$0xff pattern:$0x75316420] }
   0xf   :  { %v61_v6 = vadd.f32 %v60_v5, %v59_v4  ;;  %v53_v8 = vld.sshfl [vmem:[#allocation1 + $0x18] sm:$0xff pattern:$0x75316420]  ;;  %v64_v9 = vsel %vm58_vm0, %v52_v7, 0.0  ;;  %143 = vperm.xlu2 %863, %v44_v26  }
  0x10   :  { %v65_v10 = vsel %vm58_vm0, %v53_v8, 0.0 }
  0x11   :  { %62 = vadd.xlane.f32.xlu0 %v61_v6  ;;  %v66_v11 = vadd.f32 %v65_v10, %v64_v9 }
  0x17   :  { %866 = vset.pattern.permute.xlu2 %v907_v38 }
  0x18   :  { %203 = vperm.xlu2 %866, %v41_v19  }
  0x19   :  { %67 = vadd.xlane.f32.xlu0 %v66_v11 }
  0x20   :  { %867 = vset.pattern.permute.xlu2 %v908_v42 }
  0x21   :  { %227 = vperm.xlu2 %867, %v41_v19  }
  0x29   :  { %868 = vset.pattern.permute.xlu2 %v905_v17 }
  0x2a   :  { %252 = vperm.xlu2 %868, %v42_v43  }
  0x2d   :  { %157 = vperm.xlu0 %864, %v41_v19  }
  0x61   :  { %v980_v51 = vpop.permute.xlu2 %131 }
  0x69   :  { %v982_v55 = vpop.permute.xlu2 %143 }
  0x6a   :  { %v149_v3 = vperm.slane %v982_v55, %v965_v22 }
  0x72   :  { %v984_v60 = vpop.permute.xlu2 %203 }
  0x7b   :  { %v991_v8 = vpop.permute.xlu2 %227 }
  0x84   :  { %v63_v12 = vpop.xlane.xlu0 %62 }
  0x85   :  { %v69_v20 = vsel %vm58_vm0, %v63_v12, 0.0 }
  0x8c   :  { %v68_v16 = vpop.xlane.xlu0 %67 }
  0x8d   :  { %v70_v21 = vsel %vm58_vm0, %v68_v16, 0.0 }
  0x8e   :  { %v71_v23 = vadd.f32 %v70_v21, %v69_v20 }
  0x90   :  { %v72_v24 = vmul.f32 0.001953125, %v71_v23 }
  0x92   :  { %v77_v25 = vperm.slane %v72_v24, %v965_v22 }
  0x94   :  { %v79_v27 = vsub.f32 %v39_v0, %v77_v25  ;;  %v80_v28 = vsub.f32 %v40_v1, %v77_v25 }
  0x96   :  { %v81_v29 = vmul.f32 %v79_v27, %v79_v27  ;;  %v82_v30 = vmul.f32 %v80_v28, %v80_v28 }
  0x98   :  { %85 = vst [vmem:[#allocation1] ss:$2 sm:$0xff] %v81_v29 }
  0x99   :  { %89 = vst [vmem:[#allocation1 + $0x10] ss:$2 sm:$0xff] %v82_v30 }
  0x9f   :  { %v86_v31 = vld.sshfl [vmem:[#allocation1] sm:$0xff pattern:$0x75316420]  ;;  %v87_v32 = vld.sshfl [vmem:[#allocation1 + $0x8] sm:$0xff pattern:$0x75316420]  ;;  %v995_v14 = vpop.permute.xlu0 %157 }
  0xa0   :  { %v96_v33 = vsel %vm58_vm0, %v86_v31, 0.0  ;;  %v97_v34 = vsel %vm58_vm0, %v87_v32, 0.0  ;;  %481 = vst [vmem:[#allocation1] ss:$2 sm:$0xff] %v39_v0  ;;  %v137_v0 = vperm.slane %v980_v51, %v965_v22 }
  0xa1   :  { %v98_v35 = vadd.f32 %v97_v34, %v96_v33  ;;  %v90_v36 = vld.sshfl [vmem:[#allocation1 + $0x10] sm:$0xff pattern:$0x75316420]  ;;  %v91_v37 = vld.sshfl [vmem:[#allocation1 + $0x18] sm:$0xff pattern:$0x75316420] }
  0xa2   :  { %485 = vst [vmem:[#allocation1 + $0x10] ss:$2 sm:$0xff] %v40_v1  ;;  %v101_v39 = vsel %vm58_vm0, %v90_v36, 0.0  ;;  %v102_v40 = vsel %vm58_vm0, %v91_v37, 0.0 }
  0xa3   :  { %99 = vadd.xlane.f32.xlu1 %v98_v35  ;;  %v103_v41 = vadd.f32 %v102_v40, %v101_v39 }
  0xab   :  { %104 = vadd.xlane.f32.xlu1 %v103_v41 }
  0xc4   :  { %179 = vperm.xlu1 %865, %v41_v19  }
 0x116   :  { %v100_v44 = vpop.xlane.xlu1 %99 }
 0x117   :  { %v106_v46 = vsel %vm58_vm0, %v100_v44, 0.0 }
 0x11e   :  { %v105_v45 = vpop.xlane.xlu1 %104 }
 0x11f   :  { %v107_v47 = vsel %vm58_vm0, %v105_v45, 0.0 }
 0x120   :  { %v108_v48 = vadd.f32 %v107_v47, %v106_v46  ;;  %v1005_v47 = vpop.permute.xlu2 %252 }
 0x122   :  { %v109_v49 = vmul.f32 0.001953125, %v108_v48 }
 0x124   :  { %v110_v50 = vadd.f32 1e-05, %v109_v49 }
 0x126   :  { %869 = vrsqrt.f32 %v110_v50  ;;  %vm117_vm2 = vweird.f32 %v110_v50 }
 0x12c   :  { %v870_v52 = vpop.eup %869 }
 0x12d   :  { %v112_v53 = vmul.f32 %v870_v52, %v110_v50  ;;  %vm118_vm1 = vweird.f32 %v870_v52 }
 0x12e   :  { %vm119_vm3 = vmor %vm117_vm2, %vm118_vm1 }
 0x12f   :  { %v113_v54 = vmul.f32 %v870_v52, %v112_v53 }
 0x131   :  { %v114_v56 = vmul.f32 0.5, %v113_v54 }
 0x133   :  { %v115_v57 = vsub.f32 1.5, %v114_v56 }
 0x135   :  { %v116_v58 = vmul.f32 %v870_v52, %v115_v57 }
 0x136   :  { %v993_v13 = vpop.permute.xlu1 %179 }
 0x137   :  { %v120_v59 = vsel %vm119_vm3, %v870_v52, %v116_v58 }
 0x138   :  { %v125_v61 = vperm.slane %v120_v59, %v965_v22 }
 0x13a   :  { %v127_v62 = vmul.f32 %v125_v61, %v79_v27  ;;  %v128_v63 = vmul.f32 %v125_v61, %v80_v28 }
 0x13c   :  { %v139_v1 = vmul.f32 %v137_v0, %v127_v62  ;;  %v140_v2 = vmul.f32 %v137_v0, %v128_v63 }
 0x13e   :  { %v151_v4 = vadd.f32 %v149_v3, %v139_v1  ;;  %v152_v5 = vadd.f32 %v149_v3, %v140_v2 }
 0x140   :  { %v154_v6 = vmax.f32 %v152_v5, 0.0  ;;  %v153_v7 = vmax.f32 %v151_v4, 0.0 }
 0x142   :  { %v164_v9 = vperm.slane %v154_v6, 0  ;;  %v165_v10 = vperm.slane %v154_v6, 4  ;;  %v184_v11 = vperm.slane %v154_v6, 1  ;;  %v185_v12 = vperm.slane %v154_v6, 5 }
 0x143   :  { %v208_v15 = vperm.slane %v154_v6, 2  ;;  %v209_v16 = vperm.slane %v154_v6, 6  ;;  %v232_v17 = vperm.slane %v154_v6, 3  ;;  %v233_v18 = vperm.slane %v154_v6, 7 }
 0x144   :  { %v172_v19 = vperm.slane %v164_v9, 0  ;;  %v173_v20 = vperm.slane %v165_v10, 0  ;;  %v192_v21 = vperm.slane %v184_v11, 1  ;;  %v193_v22 = vperm.slane %v185_v12, 1 }
 0x145   :  { %v216_v23 = vperm.slane %v208_v15, 2  ;;  %v217_v24 = vperm.slane %v209_v16, 2  ;;  %v240_v25 = vperm.slane %v232_v17, 3  ;;  %v241_v26 = vperm.slane %v233_v18, 3 }
 0x146   :  { %v176_v27 = vmul.f32 %v172_v19, %v995_v14  ;;  %v177_v28 = vmul.f32 %v173_v20, %v995_v14  ;;  %v196_v29 = vmul.f32 %v192_v21, %v993_v13  ;;  %v197_v30 = vmul.f32 %v193_v22, %v993_v13 }
 0x147   :  { %v220_v31 = vmul.f32 %v216_v23, %v984_v60  ;;  %v221_v32 = vmul.f32 %v217_v24, %v984_v60  ;;  %v244_v33 = vmul.f32 %v240_v25, %v991_v8  ;;  %v245_v34 = vmul.f32 %v241_v26, %v991_v8 }
 0x148   :  { %v200_v35 = vadd.f32 %v196_v29, %v176_v27  ;;  %v201_v36 = vadd.f32 %v197_v30, %v177_v28  ;;  %v162_v37 = vperm.slane %v153_v7, 0  ;;  %v163_v38 = vperm.slane %v153_v7, 4 }
 0x149   :  { %v182_v39 = vperm.slane %v153_v7, 1  ;;  %v183_v40 = vperm.slane %v153_v7, 5  ;;  %v206_v41 = vperm.slane %v153_v7, 2  ;;  %v207_v42 = vperm.slane %v153_v7, 6 }
 0x14a   :  { %v224_v43 = vadd.f32 %v220_v31, %v200_v35  ;;  %v225_v44 = vadd.f32 %v221_v32, %v201_v36  ;;  %v170_v45 = vperm.slane %v162_v37, 0  ;;  %v171_v46 = vperm.slane %v163_v38, 0 }
 0x14b   :  { %v190_v48 = vperm.slane %v182_v39, 1  ;;  %v191_v49 = vperm.slane %v183_v40, 1  ;;  %v214_v50 = vperm.slane %v206_v41, 2  ;;  %v215_v52 = vperm.slane %v207_v42, 2 }
 0x14c   :  { %v248_v53 = vadd.f32 %v244_v33, %v224_v43  ;;  %v249_v54 = vadd.f32 %v245_v34, %v225_v44  ;;  %v174_v56 = vmul.f32 %v170_v45, %v995_v14  ;;  %v175_v57 = vmul.f32 %v171_v46, %v995_v14 }
 0x14d   :  { %v194_v58 = vmul.f32 %v190_v48, %v993_v13  ;;  %v195_v59 = vmul.f32 %v191_v49, %v993_v13  ;;  %v230_v63 = vperm.slane %v153_v7, 3  ;;  %v231_v0 = vperm.slane %v153_v7, 7 }
 0x14e   :  { %v257_v61 = vadd.f32 %v1005_v47, %v248_v53  ;;  %v258_v62 = vadd.f32 %v1005_v47, %v249_v54  ;;  %v218_v3 = vmul.f32 %v214_v50, %v984_v60  ;;  %v219_v4 = vmul.f32 %v215_v52, %v984_v60 }
 0x14f   :  { %v198_v1 = vadd.f32 %v194_v58, %v174_v56  ;;  %v199_v2 = vadd.f32 %v195_v59, %v175_v57  ;;  %v238_v9 = vperm.slane %v230_v63, 3  ;;  %v239_v10 = vperm.slane %v231_v0, 3 }
 0x150   :  { %v264_v5 = vsel %vm58_vm0, %v257_v61, 0.0  ;;  %v265_v6 = vsel %vm58_vm0, %v258_v62, 0.0 }
 0x151   :  { %v266_v11 = vadd.f32 %v265_v6, %v264_v5  ;;  %v222_v12 = vadd.f32 %v218_v3, %v198_v1  ;;  %v223_v15 = vadd.f32 %v219_v4, %v199_v2  ;;  %v242_v16 = vmul.f32 %v238_v9, %v991_v8 }
 0x152   :  { %v243_v17 = vmul.f32 %v239_v10, %v991_v8 }
 0x153   :  { %267 = vadd.xlane.f32.xlu1 %v266_v11  ;;  %v246_v7 = vadd.f32 %v242_v16, %v222_v12 }
 0x154   :  { %v247_v18 = vadd.f32 %v243_v17, %v223_v15 }
 0x155   :  { %v255_v19 = vadd.f32 %v1005_v47, %v246_v7 }
 0x156   :  { %v256_v20 = vadd.f32 %v1005_v47, %v247_v18 }
 0x157   :  { %v259_v21 = vsel %vm58_vm0, %v255_v19, 0.0 }
 0x158   :  { %v260_v22 = vsel %vm58_vm0, %v256_v20, 0.0 }
 0x159   :  { %v261_v23 = vadd.f32 %v260_v22, %v259_v21 }
 0x15b   :  { %262 = vadd.xlane.f32.xlu2 %v261_v23 }
 0x1c6   :  { %v268_v24 = vpop.xlane.xlu1 %267 }
 0x1c7   :  { %v270_v25 = vsel %vm58_vm0, %v268_v24, 0.0 }
 0x1ce   :  { %v263_v26 = vpop.xlane.xlu2 %262 }
 0x1cf   :  { %v269_v27 = vsel %vm58_vm0, %v263_v26, 0.0 }
 0x1d0   :  { %v271_v28 = vadd.f32 %v270_v25, %v269_v27 }
 0x1d2   :  { %v272_v29 = vmul.f32 0.001953125, %v271_v28 }
 0x1d4   :  { %v275_v30 = vsub.f32 %v257_v61, %v272_v29  ;;  %v276_v31 = vsub.f32 %v258_v62, %v272_v29  ;;  %v273_v32 = vsub.f32 %v255_v19, %v272_v29  ;;  %v274_v33 = vsub.f32 %v256_v20, %v272_v29 }
 0x1d6   :  { %v279_v34 = vmul.f32 %v275_v30, %v275_v30  ;;  %v280_v35 = vmul.f32 %v276_v31, %v276_v31  ;;  %v277_v36 = vmul.f32 %v273_v32, %v273_v32  ;;  %v278_v37 = vmul.f32 %v274_v33, %v274_v33 }
 0x1d8   :  { %v286_v38 = vsel %vm58_vm0, %v279_v34, 0.0  ;;  %v287_v39 = vsel %vm58_vm0, %v280_v35, 0.0  ;;  %v281_v40 = vsel %vm58_vm0, %v277_v36, 0.0  ;;  %v282_v41 = vsel %vm58_vm0, %v278_v37, 0.0 }
 0x1d9   :  { %v288_v42 = vadd.f32 %v287_v39, %v286_v38  ;;  %v283_v43 = vadd.f32 %v282_v41, %v281_v40 }
 0x1db   :  { %289 = vadd.xlane.f32.xlu2 %v288_v42  ;;  %284 = vadd.xlane.f32.xlu0 %v283_v43 }
 0x24e   :  { %v290_v44 = vpop.xlane.xlu2 %289  ;;  %v285_v45 = vpop.xlane.xlu0 %284 }
 0x24f   :  { %v292_v46 = vsel %vm58_vm0, %v290_v44, 0.0  ;;  %v291_v48 = vsel %vm58_vm0, %v285_v45, 0.0 }
 0x250   :  { %v293_v49 = vadd.f32 %v292_v46, %v291_v48 }
 0x252   :  { %v294_v50 = vmul.f32 0.001953125, %v293_v49 }
 0x254   :  { %v295_v52 = vadd.f32 1e-05, %v294_v50 }
 0x256   :  { %871 = vrsqrt.f32 %v295_v52  ;;  %vm302_vm5 = vweird.f32 %v295_v52 }
 0x25c   :  { %v872_v53 = vpop.eup %871 }
 0x25d   :  { %v297_v54 = vmul.f32 %v872_v53, %v295_v52  ;;  %vm303_vm4 = vweird.f32 %v872_v53 }
 0x25e   :  { %vm304_vm6 = vmor %vm302_vm5, %vm303_vm4 }
 0x25f   :  { %v298_v56 = vmul.f32 %v872_v53, %v297_v54 }
 0x261   :  { %v299_v57 = vmul.f32 0.5, %v298_v56 }
 0x263   :  { %v300_v58 = vsub.f32 1.5, %v299_v57 }
 0x265   :  { %v301_v59 = vmul.f32 %v872_v53, %v300_v58 }
 0x267   :  { %v305_v61 = vsel %vm304_vm6, %v872_v53, %v301_v59 }
 0x268   :  { %v306_v62 = vmul.f32 %v305_v61, %v273_v32  ;;  %v307_v63 = vmul.f32 %v305_v61, %v274_v33  ;;  %v308_v0 = vmul.f32 %v305_v61, %v275_v30  ;;  %v309_v1 = vmul.f32 %v305_v61, %v276_v31 }
 0x26a   :  { %v310_v2 = vmul.f32 %v306_v62, %v980_v51  ;;  %v311_v3 = vmul.f32 %v307_v63, %v980_v51  ;;  %v312_v4 = vmul.f32 %v308_v0, %v980_v51  ;;  %v313_v5 = vmul.f32 %v309_v1, %v980_v51 }
 0x26c   :  { %v314_v6 = vadd.f32 %v310_v2, %v982_v55  ;;  %v315_v9 = vadd.f32 %v311_v3, %v982_v55  ;;  %v316_v10 = vadd.f32 %v312_v4, %v982_v55  ;;  %v317_v11 = vadd.f32 %v313_v5, %v982_v55 }
 0x26e   :  { %v320_v12 = vmax.f32 %v316_v10, 0.0  ;;  %v321_v15 = vmax.f32 %v317_v11, 0.0  ;;  %v318_v16 = vmax.f32 %v314_v6, 0.0  ;;  %v319_v17 = vmax.f32 %v315_v9, 0.0 }
 0x270   :  { %v324_v7 = vperm.slane %v320_v12, 0  ;;  %v325_v18 = vperm.slane %v321_v15, 0  ;;  %v332_v19 = vperm.slane %v320_v12, 1  ;;  %v333_v20 = vperm.slane %v321_v15, 1 }
 0x271   :  { %v344_v21 = vperm.slane %v320_v12, 2  ;;  %v345_v22 = vperm.slane %v321_v15, 2  ;;  %v356_v23 = vperm.slane %v320_v12, 3  ;;  %v357_v24 = vperm.slane %v321_v15, 3  ;;  %v1075_v15 = vld [vmem:[#allocation2 + $0x168] sm:$0xff] }
 0x272   :  { %v328_v25 = vmul.f32 %v324_v7, %v995_v14  ;;  %v329_v26 = vmul.f32 %v325_v18, %v995_v14  ;;  %v336_v27 = vmul.f32 %v332_v19, %v993_v13  ;;  %v337_v28 = vmul.f32 %v333_v20, %v993_v13  ;;  %592 = vmatpush.msra.mxu0 %v1075_v15  ;;  %v1083_v7 = vld [vmem:[#allocation2 + $0x2f0] sm:$0xff]  ;;  %v1091_v20 = vld [vmem:[#allocation2 + $0x158] sm:$0xff] }
 0x273   :  { %v348_v29 = vmul.f32 %v344_v21, %v984_v60  ;;  %v349_v30 = vmul.f32 %v345_v22, %v984_v60  ;;  %v360_v31 = vmul.f32 %v356_v23, %v991_v8  ;;  %v361_v32 = vmul.f32 %v357_v24, %v991_v8  ;;  %v1085_v18 = vld [vmem:[#allocation2 + $0x150] sm:$0xff]  ;;  %652 = vmatpush.msra.mxu3 %v1083_v7  ;;  %v1093_v21 = vld [vmem:[#allocation2 + $0x2d8] sm:$0xff]  ;;  %v1101_v24 = vld [vmem:[#allocation2 + $0x140] sm:$0xff] }
 0x274   :  { %v340_v33 = vadd.f32 %v336_v27, %v328_v25  ;;  %v341_v34 = vadd.f32 %v337_v28, %v329_v26  ;;  %v322_v35 = vperm.slane %v318_v16, 0  ;;  %v323_v36 = vperm.slane %v319_v17, 0  ;;  %v1087_v19 = vld [vmem:[#allocation2 + $0x2d0] sm:$0xff]  ;;  %v1095_v22 = vld [vmem:[#allocation2 + $0x138] sm:$0xff]  ;;  %593 = vmatpush.msra.mxu0 %v1085_v18  ;;  %v1103_v25 = vld [vmem:[#allocation2 + $0x2c0] sm:$0xff] }
 0x275   :  { %v330_v37 = vperm.slane %v318_v16, 1  ;;  %v331_v38 = vperm.slane %v319_v17, 1  ;;  %v342_v39 = vperm.slane %v318_v16, 2  ;;  %v343_v40 = vperm.slane %v319_v17, 2  ;;  %v1099_v23 = vld [vmem:[#allocation2 + $0x2b8] sm:$0xff]  ;;  %653 = vmatpush.msra.mxu3 %v1093_v21  ;;  %v1107_v26 = vld [vmem:[#allocation2 + $0x120] sm:$0xff] }
 0x276   :  { %v352_v41 = vadd.f32 %v348_v29, %v340_v33  ;;  %v353_v42 = vadd.f32 %v349_v30, %v341_v34  ;;  %v326_v43 = vmul.f32 %v322_v35, %v995_v14  ;;  %v327_v44 = vmul.f32 %v323_v36, %v995_v14  ;;  %v1109_v27 = vld [vmem:[#allocation2 + $0x2a0] sm:$0xff]  ;;  %594 = vmatpush.msra.mxu0 %v1095_v22  ;;  %v1113_v28 = vld [vmem:[#allocation2 + $0x128] sm:$0xff]  ;;  %v1127_v33 = vld [vmem:[#allocation2 + $0x290] sm:$0xff] }
 0x277   :  { %v334_v45 = vmul.f32 %v330_v37, %v993_v13  ;;  %v335_v46 = vmul.f32 %v331_v38, %v993_v13  ;;  %v354_v50 = vperm.slane %v318_v16, 3  ;;  %v355_v52 = vperm.slane %v319_v17, 3  ;;  %v1077_v16 = vld [vmem:[#allocation2 + $0x2e8] sm:$0xff]  ;;  %v1079_v17 = vld [vmem:[#allocation2 + $0x170] sm:$0xff]  ;;  %654 = vmatpush.msra.mxu3 %v1103_v25  ;;  %v1137_v36 = vld [vmem:[#allocation2 + $0xf8] sm:$0xff] }
 0x278   :  { %v364_v48 = vadd.f32 %v360_v31, %v352_v41  ;;  %v365_v49 = vadd.f32 %v361_v32, %v353_v42  ;;  %v346_v56 = vmul.f32 %v342_v39, %v984_v60  ;;  %v347_v57 = vmul.f32 %v343_v40, %v984_v60  ;;  %612 = vmatpush.msra.mxu1 %v1077_v16  ;;  %v1115_v29 = vld [vmem:[#allocation2 + $0x2a8] sm:$0xff]  ;;  %v1125_v32 = vld [vmem:[#allocation2 + $0x110] sm:$0xff]  ;;  %v1139_v37 = vld [vmem:[#allocation2 + $0x278] sm:$0xff] }
 0x279   :  { %v338_v53 = vadd.f32 %v334_v45, %v326_v43  ;;  %v339_v54 = vadd.f32 %v335_v46, %v327_v44  ;;  %v358_v63 = vmul.f32 %v354_v50, %v991_v8  ;;  %v359_v0 = vmul.f32 %v355_v52, %v991_v8  ;;  %632 = vmatpush.msra.mxu2 %v1079_v17  ;;  %v1119_v30 = vld [vmem:[#allocation2 + $0x108] sm:$0xff]  ;;  %v1131_v34 = vld [vmem:[#allocation2 + $0xf0] sm:$0xff]  ;;  %v1143_v38 = vld [vmem:[#allocation2 + $0xd8] sm:$0xff] }
 0x27a   :  { %v1054_v58 = vadd.f32 %v364_v48, %v1005_v47  ;;  %v1057_v59 = vadd.f32 %v365_v49, %v1005_v47  ;;  %613 = vmatpush.msra.mxu1 %v1087_v19  ;;  %v1121_v31 = vld [vmem:[#allocation2 + $0x288] sm:$0xff]  ;;  %595 = vmatpush.msra.mxu0 %v1107_v26  ;;  %v1133_v35 = vld [vmem:[#allocation2 + $0x270] sm:$0xff]  ;;  %1574 = vst [vmem:[#allocation5_spill] sm:$0xff] %v1139_v37  ;;  %v1145_v39 = vld [vmem:[#allocation2 + $0x258] sm:$0xff] }
 0x27b   :  { %v350_v61 = vadd.f32 %v346_v56, %v338_v53  ;;  %v351_v62 = vadd.f32 %v347_v57, %v339_v54  ;;  %633 = vmatpush.msra.mxu2 %v1091_v20  ;;  %655 = vmatpush.msra.mxu3 %v1115_v29  ;;  %v1149_v40 = vld [vmem:[#allocation2 + $0xe0] sm:$0xff]  ;;  %v1161_v44 = vld [vmem:[#allocation2 + $0xc8] sm:$0xff] }
 0x27c   :  { %v375_v1 = vsel %vm58_vm0, %v1054_v58, 0.0  ;;  %v376_v2 = vsel %vm58_vm0, %v1057_v59, 0.0  ;;  %614 = vmatpush.msra.mxu1 %v1099_v23  ;;  %596 = vmatpush.msra.mxu0 %v1119_v30  ;;  %1575 = vst [vmem:[#allocation6_spill] sm:$0xff] %v1149_v40  ;;  %v1151_v41 = vld [vmem:[#allocation2 + $0x260] sm:$0xff]  ;;  %v1163_v45 = vld [vmem:[#allocation2 + $0x248] sm:$0xff] }
 0x27d   :  { %v377_v3 = vadd.f32 %v376_v2, %v375_v1  ;;  %v362_v4 = vadd.f32 %v358_v63, %v350_v61  ;;  %v363_v5 = vadd.f32 %v359_v0, %v351_v62  ;;  %634 = vmatpush.msra.mxu2 %v1101_v24  ;;  %656 = vmatpush.msra.mxu3 %v1127_v33  ;;  %v1155_v42 = vld [vmem:[#allocation2 + $0xc0] sm:$0xff] }
 0x27e   :  { %615 = vmatpush.msra.mxu1 %v1109_v27  ;;  %597 = vmatpush.msra.mxu0 %v1131_v34  ;;  %1576 = vst [vmem:[#allocation7_spill] sm:$0xff] %v1151_v41  ;;  %v1157_v43 = vld [vmem:[#allocation2 + $0x240] sm:$0xff] }
 0x27f   :  { %378 = vadd.xlane.f32.xlu2 %v377_v3  ;;  %v1066_v6 = vadd.f32 %v362_v4, %v1005_v47  ;;  %v1069_v9 = vadd.f32 %v363_v5, %v1005_v47  ;;  %635 = vmatpush.msra.mxu2 %v1113_v28  ;;  %1577 = vst [vmem:[#allocation8_spill] sm:$0xff] %v1161_v44 }
 0x280   :  { %616 = vmatpush.msra.mxu1 %v1121_v31  ;;  %657 = vmatpush.msra.mxu3 %v1139_v37  ;;  %1578 = vst [vmem:[#allocation9_spill] sm:$0xff] %v1163_v45  ;;  %v1347_v37 = vld [vmem:[#allocation2 + $0x250] sm:$0xff] }
 0x281   :  { %v370_v10 = vsel %vm58_vm0, %v1066_v6, 0.0  ;;  %v371_v11 = vsel %vm58_vm0, %v1069_v9, 0.0  ;;  %636 = vmatpush.msra.mxu2 %v1125_v32  ;;  %598 = vmatpush.msra.mxu0 %v1143_v38 }
 0x282   :  { %v372_v12 = vadd.f32 %v371_v11, %v370_v10  ;;  %617 = vmatpush.msra.mxu1 %v1133_v35  ;;  %658 = vmatpush.msra.mxu3 %v1151_v41  ;;  %v1201_v10 = vld [vmem:[#allocation2 + $0xb0] sm:$0xff] }
 0x283   :  { %637 = vmatpush.msra.mxu2 %v1137_v36  ;;  %599 = vmatpush.msra.mxu0 %v1155_v42  ;;  %1579 = vst [vmem:[#allocation10_spill] sm:$0xff] %v1201_v10  ;;  %v1205_v11 = vld [vmem:[#allocation2 + $0x230] sm:$0xff] }
 0x284   :  { %373 = vadd.xlane.f32.xlu1 %v372_v12  ;;  %618 = vmatpush.msra.mxu1 %v1145_v39  ;;  %1580 = vst [vmem:[#allocation11_spill] sm:$0xff] %v1205_v11  ;;  %v1209_v12 = vld [vmem:[#allocation2 + $0x90] sm:$0xff] }
 0x285   :  { %638 = vmatpush.msra.mxu2 %v1149_v40  ;;  %659 = vmatpush.msra.mxu3 %v1163_v45  ;;  %v1293_v45 = vld [vmem:[#allocation2 + $0x2f8] sm:$0xff]  ;;  %v1345_v40 = vld [vmem:[#allocation2 + $0xd0] sm:$0xff] }
 0x286   :  { %619 = vmatpush.msra.mxu1 %v1157_v43 }
 0x287   :  { %639 = vmatpush.msra.mxu2 %v1161_v44  ;;  %660 = vmatpush.msra.mxu3 %v1205_v11  ;;  %v1289_v11 = vld [vmem:[#allocation2 + $0x188] sm:$0xff] }
 0x288   :  { %1594 = vst [vmem:[#allocation25_spill] sm:$0xff] %v1289_v11  ;;  %v1307_v44 = vld [vmem:[#allocation2 + $0x148] sm:$0xff] }
 0x289   :  { %640 = vmatpush.msra.mxu2 %v1201_v10  ;;  %v1291_v10 = vld [vmem:[#allocation2 + $0x178] sm:$0xff] }
 0x2f2   :  { %v379_v46 = vpop.xlane.xlu2 %378 }
 0x2f3   :  { %v381_v48 = vsel %vm58_vm0, %v379_v46, 0.0  ;;  %v1211_v46 = vld [vmem:[#allocation2 + $0x210] sm:$0xff] }
 0x2f7   :  { %v374_v49 = vpop.xlane.xlu1 %373 }
 0x2f8   :  { %v380_v50 = vsel %vm58_vm0, %v374_v49, 0.0  ;;  %v1217_v49 = vld [vmem:[#allocation2 + $0x218] sm:$0xff] }
 0x2f9   :  { %v382_v52 = vadd.f32 %v381_v48, %v380_v50  ;;  %v1213_v48 = vld [vmem:[#allocation2 + $0x98] sm:$0xff]  ;;  %1582 = vst [vmem:[#allocation13_spill] sm:$0xff] %v1217_v49  ;;  %661 = vmatpush.msra.mxu3 %v1217_v49  ;;  %v1277_v49 = vld [vmem:[#allocation2 + $0x1a0] sm:$0xff] }
 0x2fa   :  { %1581 = vst [vmem:[#allocation12_spill] sm:$0xff] %v1213_v48  ;;  %641 = vmatpush.msra.mxu2 %v1213_v48  ;;  %v1221_v50 = vld [vmem:[#allocation2 + $0x78] sm:$0xff]  ;;  %v1281_v48 = vld [vmem:[#allocation2] sm:$0xff] }
 0x2fb   :  { %v383_v53 = vmul.f32 0.001953125, %v382_v52  ;;  %v1223_v52 = vld [vmem:[#allocation2 + $0x1f8] sm:$0xff]  ;;  %1592 = vst [vmem:[#allocation23_spill] sm:$0xff] %v1277_v49 }
 0x2fd   :  { %v1174_v54 = vsub.f32 %v1054_v58, %v383_v53  ;;  %v1177_v56 = vsub.f32 %v1057_v59, %v383_v53  ;;  %v1180_v57 = vsub.f32 %v1066_v6, %v383_v53  ;;  %v1183_v61 = vsub.f32 %v1069_v9, %v383_v53  ;;  %v1197_v6 = vld [vmem:[#allocation2 + $0xa8] sm:$0xff]  ;;  %v1225_v53 = vld [vmem:[#allocation2 + $0x80] sm:$0xff] }
 0x2fe   :  { %v1199_v9 = vld [vmem:[#allocation2 + $0x228] sm:$0xff]  ;;  %600 = vmatpush.msra.mxu0 %v1197_v6  ;;  %1583 = vst [vmem:[#allocation14_spill] sm:$0xff] %v1225_v53  ;;  %642 = vmatpush.msra.mxu2 %v1225_v53  ;;  %v1269_v53 = vld [vmem:[#allocation2 + $0x18] sm:$0xff] }
 0x2ff   :  { %v390_v62 = vmul.f32 %v1174_v54, %v1174_v54  ;;  %v391_v63 = vmul.f32 %v1177_v56, %v1177_v56  ;;  %v388_v0 = vmul.f32 %v1180_v57, %v1180_v57  ;;  %v389_v58 = vmul.f32 %v1183_v61, %v1183_v61  ;;  %620 = vmatpush.msra.mxu1 %v1199_v9 }
 0x300   :  { %601 = vmatpush.msra.mxu0 %v1209_v12 }
 0x301   :  { %v397_v59 = vsel %vm58_vm0, %v390_v62, 0.0  ;;  %v398_v1 = vsel %vm58_vm0, %v391_v63, 0.0  ;;  %v392_v2 = vsel %vm58_vm0, %v388_v0, 0.0  ;;  %v393_v3 = vsel %vm58_vm0, %v389_v58, 0.0  ;;  %621 = vmatpush.msra.mxu1 %v1211_v46  ;;  %v1229_v62 = vld [vmem:[#allocation2 + $0x200] sm:$0xff]  ;;  %v1237_v58 = vld [vmem:[#allocation2 + $0x68] sm:$0xff] }
 0x302   :  { %v399_v4 = vadd.f32 %v398_v1, %v397_v59  ;;  %v394_v5 = vadd.f32 %v393_v3, %v392_v2  ;;  %602 = vmatpush.msra.mxu0 %v1221_v50  ;;  %1584 = vst [vmem:[#allocation15_spill] sm:$0xff] %v1229_v62  ;;  %662 = vmatpush.msra.mxu3 %v1229_v62  ;;  %v1233_v63 = vld [vmem:[#allocation2 + $0x60] sm:$0xff]  ;;  %v1241_v59 = vld [vmem:[#allocation2 + $0x1e8] sm:$0xff]  ;;  %v1249_v3 = vld [vmem:[#allocation2 + $0x50] sm:$0xff] }
 0x303   :  { %622 = vmatpush.msra.mxu1 %v1223_v52  ;;  %v1235_v0 = vld [vmem:[#allocation2 + $0x1e0] sm:$0xff]  ;;  %1585 = vst [vmem:[#allocation16_spill] sm:$0xff] %v1237_v58  ;;  %643 = vmatpush.msra.mxu2 %v1237_v58  ;;  %v1245_v1 = vld [vmem:[#allocation2 + $0x48] sm:$0xff]  ;;  %v1259_v58 = vld [vmem:[#allocation2 + $0x1b0] sm:$0xff] }
 0x304   :  { %400 = vadd.xlane.f32.xlu2 %v399_v4  ;;  %395 = vadd.xlane.f32.xlu1 %v394_v5  ;;  %1586 = vst [vmem:[#allocation17_spill] sm:$0xff] %v1241_v59  ;;  %v1247_v2 = vld [vmem:[#allocation2 + $0x1c8] sm:$0xff]  ;;  %v1253_v4 = vld [vmem:[#allocation2 + $0x1d0] sm:$0xff]  ;;  %v1265_v62 = vld [vmem:[#allocation2 + $0x1b8] sm:$0xff] }
 0x305   :  { %603 = vmatpush.msra.mxu0 %v1233_v63  ;;  %623 = vmatpush.msra.mxu1 %v1235_v0  ;;  %1587 = vst [vmem:[#allocation18_spill] sm:$0xff] %v1249_v3  ;;  %v1257_v5 = vld [vmem:[#allocation2 + $0x30] sm:$0xff] }
 0x306   :  { %663 = vmatpush.msra.mxu3 %v1241_v59  ;;  %1588 = vst [vmem:[#allocation19_spill] sm:$0xff] %v1253_v4  ;;  %644 = vmatpush.msra.mxu2 %v1249_v3  ;;  %v1261_v59 = vld [vmem:[#allocation2 + $0x38] sm:$0xff] }
 0x307   :  { %604 = vmatpush.msra.mxu0 %v1245_v1  ;;  %624 = vmatpush.msra.mxu1 %v1247_v2  ;;  %1589 = vst [vmem:[#allocation20_spill] sm:$0xff] %v1261_v59  ;;  %v1271_v3 = vld [vmem:[#allocation2 + $0x198] sm:$0xff] }
 0x308   :  { %664 = vmatpush.msra.mxu3 %v1253_v4  ;;  %1590 = vst [vmem:[#allocation21_spill] sm:$0xff] %v1265_v62  ;;  %645 = vmatpush.msra.mxu2 %v1261_v59  ;;  %v1273_v4 = vld [vmem:[#allocation2 + $0x20] sm:$0xff] }
 0x309   :  { %605 = vmatpush.msra.mxu0 %v1257_v5  ;;  %625 = vmatpush.msra.mxu1 %v1259_v58  ;;  %1591 = vst [vmem:[#allocation22_spill] sm:$0xff] %v1273_v4  ;;  %v1283_v59 = vld [vmem:[#allocation2 + $0x180] sm:$0xff] }
 0x30a   :  { %665 = vmatpush.msra.mxu3 %v1265_v62  ;;  %646 = vmatpush.msra.mxu2 %v1273_v4  ;;  %v1285_v62 = vld [vmem:[#allocation2 + $0x8] sm:$0xff]  ;;  %v1301_v4 = vld [vmem:[#allocation2 + $0x2e0] sm:$0xff] }
 0x30b   :  { %606 = vmatpush.msra.mxu0 %v1269_v53  ;;  %626 = vmatpush.msra.mxu1 %v1271_v3  ;;  %1593 = vst [vmem:[#allocation24_spill] sm:$0xff] %v1285_v62 }
 0x30c   :  { %666 = vmatpush.msra.mxu3 %v1277_v49  ;;  %647 = vmatpush.msra.mxu2 %v1285_v62  ;;  %v1299_v49 = vld [vmem:[#allocation2 + $0x160] sm:$0xff]  ;;  %v1309_v62 = vld [vmem:[#allocation2 + $0x2c8] sm:$0xff] }
 0x30d   :  { %607 = vmatpush.msra.mxu0 %v1281_v48  ;;  %627 = vmatpush.msra.mxu1 %v1283_v59 }
 0x30e   :  { %667 = vmatpush.msra.mxu3 %v1289_v11  ;;  %720 = vmatpush.msrb.mxu2 %v1075_v15  ;;  %v1315_v11 = vld [vmem:[#allocation2 + $0x130] sm:$0xff] }
 0x30f   :  { %672 = vmatpush.msrb.mxu0 %v1291_v10  ;;  %692 = vmatpush.msrb.mxu1 %v1293_v45  ;;  %v1317_v15 = vld [vmem:[#allocation2 + $0x2b0] sm:$0xff] }
 0x310   :  { %740 = vmatpush.msrb.mxu3 %v1077_v16  ;;  %721 = vmatpush.msrb.mxu2 %v1085_v18  ;;  %v1323_v16 = vld [vmem:[#allocation2 + $0x118] sm:$0xff] }
 0x311   :  { %673 = vmatpush.msrb.mxu0 %v1299_v49  ;;  %693 = vmatpush.msrb.mxu1 %v1301_v4  ;;  %v1325_v18 = vld [vmem:[#allocation2 + $0x298] sm:$0xff] }
 0x312   :  { %741 = vmatpush.msrb.mxu3 %v1087_v19  ;;  %722 = vmatpush.msrb.mxu2 %v1095_v22  ;;  %v1331_v19 = vld [vmem:[#allocation2 + $0x100] sm:$0xff] }
 0x313   :  { %674 = vmatpush.msrb.mxu0 %v1307_v44  ;;  %694 = vmatpush.msrb.mxu1 %v1309_v62  ;;  %v1333_v22 = vld [vmem:[#allocation2 + $0x280] sm:$0xff] }
 0x314   :  { %742 = vmatpush.msrb.mxu3 %v1099_v23  ;;  %723 = vmatpush.msrb.mxu2 %v1107_v26  ;;  %1595 = vst [vmem:[#allocation26_spill] sm:$0xff] %v1333_v22  ;;  %v1339_v23 = vld [vmem:[#allocation2 + $0xe8] sm:$0xff] }
 0x315   :  { %675 = vmatpush.msrb.mxu0 %v1315_v11  ;;  %695 = vmatpush.msrb.mxu1 %v1317_v15  ;;  %v1341_v26 = vld [vmem:[#allocation2 + $0x268] sm:$0xff] }
 0x316   :  { %743 = vmatpush.msrb.mxu3 %v1109_v27  ;;  %724 = vmatpush.msrb.mxu2 %v1119_v30 }
 0x317   :  { %676 = vmatpush.msrb.mxu0 %v1323_v16  ;;  %696 = vmatpush.msrb.mxu1 %v1325_v18 }
 0x318   :  { %744 = vmatpush.msrb.mxu3 %v1121_v31  ;;  %725 = vmatpush.msrb.mxu2 %v1131_v34  ;;  %v1355_v34 = vld [vmem:[#allocation2 + $0xb8] sm:$0xff] }
 0x319   :  { %677 = vmatpush.msrb.mxu0 %v1331_v19  ;;  %697 = vmatpush.msrb.mxu1 %v1333_v22 }
 0x31a   :  { %745 = vmatpush.msrb.mxu3 %v1133_v35  ;;  %726 = vmatpush.msrb.mxu2 %v1143_v38  ;;  %v1357_v35 = vld [vmem:[#allocation2 + $0x238] sm:$0xff] }
 0x31b   :  { %678 = vmatpush.msrb.mxu0 %v1339_v23  ;;  %698 = vmatpush.msrb.mxu1 %v1341_v26 }
 0x31c   :  { %746 = vmatpush.msrb.mxu3 %v1145_v39  ;;  %727 = vmatpush.msrb.mxu2 %v1155_v42  ;;  %v1371_v39 = vld [vmem:[#allocation2 + $0x88] sm:$0xff]  ;;  %v1379_v42 = vld [vmem:[#allocation2 + $0x70] sm:$0xff] }
 0x31d   :  { %679 = vmatpush.msrb.mxu0 %v1345_v40  ;;  %699 = vmatpush.msrb.mxu1 %v1347_v37  ;;  %1596 = vst [vmem:[#allocation27_spill] sm:$0xff] %v1379_v42 }
 0x31e   :  { %747 = vmatpush.msrb.mxu3 %v1157_v43  ;;  %728 = vmatpush.msrb.mxu2 %v1197_v6  ;;  %v1381_v43 = vld [vmem:[#allocation2 + $0x1f0] sm:$0xff]  ;;  %v1387_v6 = vld [vmem:[#allocation2 + $0x58] sm:$0xff] }
 0x31f   :  { %680 = vmatpush.msrb.mxu0 %v1355_v34  ;;  %700 = vmatpush.msrb.mxu1 %v1357_v35  ;;  %1597 = vst [vmem:[#allocation28_spill] sm:$0xff] %v1381_v43 }
 0x320   :  { %748 = vmatpush.msrb.mxu3 %v1199_v9  ;;  %729 = vmatpush.msrb.mxu2 %v1209_v12  ;;  %1598 = vst [vmem:[#allocation29_spill] sm:$0xff] %v1387_v6  ;;  %v1389_v9 = vld [vmem:[#allocation2 + $0x1d8] sm:$0xff]  ;;  %v1395_v12 = vld [vmem:[#allocation2 + $0x40] sm:$0xff] }
 0x321   :  { %1599 = vst [vmem:[#allocation30_spill] sm:$0xff] %v1389_v9 }
 0x322   :  { %749 = vmatpush.msrb.mxu3 %v1211_v46  ;;  %730 = vmatpush.msrb.mxu2 %v1221_v50  ;;  %1600 = vst [vmem:[#allocation31_spill] sm:$0xff] %v1395_v12  ;;  %v1397_v46 = vld [vmem:[#allocation2 + $0x1c0] sm:$0xff] }
 0x323   :  { %1601 = vst [vmem:[#allocation32_spill] sm:$0xff] %v1397_v46 }
 0x324   :  { %750 = vmatpush.msrb.mxu3 %v1223_v52  ;;  %731 = vmatpush.msrb.mxu2 %v1233_v63  ;;  %v1403_v52 = vld [vmem:[#allocation2 + $0x28] sm:$0xff] }
 0x325   :  { %1602 = vst [vmem:[#allocation33_spill] sm:$0xff] %v1403_v52 }
 0x326   :  { %751 = vmatpush.msrb.mxu3 %v1235_v0  ;;  %732 = vmatpush.msrb.mxu2 %v1245_v1  ;;  %v1411_v0 = vld [vmem:[#allocation2 + $0x10] sm:$0xff] }
 0x327   :  { %1604 = vst [vmem:[#allocation35_spill] sm:$0xff] %v1411_v0 }
 0x328   :  { %752 = vmatpush.msrb.mxu3 %v1247_v2  ;;  %733 = vmatpush.msrb.mxu2 %v1257_v5 }
 0x32a   :  { %753 = vmatpush.msrb.mxu3 %v1259_v58  ;;  %734 = vmatpush.msrb.mxu2 %v1269_v53 }
 0x32c   :  { %754 = vmatpush.msrb.mxu3 %v1271_v3  ;;  %735 = vmatpush.msrb.mxu2 %v1281_v48 }
 0x32e   :  { %755 = vmatpush.msrb.mxu3 %v1283_v59 }
 0x377   :  { %v401_v27 = vpop.xlane.xlu2 %400  ;;  %v396_v41 = vpop.xlane.xlu1 %395 }
 0x378   :  { %v403_v30 = vsel %vm58_vm0, %v401_v27, 0.0  ;;  %v402_v31 = vsel %vm58_vm0, %v396_v41, 0.0  ;;  %v1363_v41 = vld [vmem:[#allocation2 + $0xa0] sm:$0xff] }
 0x379   :  { %v404_v22 = vadd.f32 %v403_v30, %v402_v31  ;;  %v1365_v30 = vld [vmem:[#allocation2 + $0x220] sm:$0xff]  ;;  %681 = vmatpush.msrb.mxu0 %v1363_v41  ;;  %v1405_v31 = vld [vmem:[#allocation2 + $0x1a8] sm:$0xff] }
 0x37a   :  { %701 = vmatpush.msrb.mxu1 %v1365_v30  ;;  %1603 = vst [vmem:[#allocation34_spill] sm:$0xff] %v1405_v31 }
 0x37b   :  { %v405_v27 = vmul.f32 0.001953125, %v404_v22  ;;  %v1373_v22 = vld [vmem:[#allocation2 + $0x208] sm:$0xff]  ;;  %682 = vmatpush.msrb.mxu0 %v1371_v39 }
 0x37c   :  { %702 = vmatpush.msrb.mxu1 %v1373_v22 }
 0x37d   :  { %v406_v38 = vadd.f32 1e-05, %v405_v27  ;;  %683 = vmatpush.msrb.mxu0 %v1379_v42  ;;  %v1413_v27 = vld [vmem:[#allocation2 + $0x190] sm:$0xff] }
 0x37e   :  { %703 = vmatpush.msrb.mxu1 %v1381_v43  ;;  %1605 = vst [vmem:[#allocation36_spill] sm:$0xff] %v1413_v27  ;;  %v482_v43 = vld.sshfl [vmem:[#allocation1] sm:$0xff pattern:$0x75316420] }
 0x37f   :  { %873 = vrsqrt.f32 %v406_v38  ;;  %684 = vmatpush.msrb.mxu0 %v1387_v6  ;;  %vm413_vm8 = vweird.f32 %v406_v38 }
 0x380   :  { %704 = vmatpush.msrb.mxu1 %v1389_v9 }
 0x381   :  { %685 = vmatpush.msrb.mxu0 %v1395_v12 }
 0x382   :  { %705 = vmatpush.msrb.mxu1 %v1397_v46 }
 0x383   :  { %686 = vmatpush.msrb.mxu0 %v1403_v52 }
 0x384   :  { %706 = vmatpush.msrb.mxu1 %v1405_v31 }
 0x385   :  { %v874_v50 = vpop.eup %873  ;;  %687 = vmatpush.msrb.mxu0 %v1411_v0 }
 0x386   :  { %v408_v63 = vmul.f32 %v874_v50, %v406_v38  ;;  %707 = vmatpush.msrb.mxu1 %v1413_v27  ;;  %vm414_vm7 = vweird.f32 %v874_v50 }
 0x387   :  { %vm415_vm9 = vmor %vm413_vm8, %vm414_vm7 }
 0x388   :  { %v409_v1 = vmul.f32 %v874_v50, %v408_v63 }
 0x38a   :  { %v410_v2 = vmul.f32 0.5, %v409_v1 }
 0x38c   :  { %v411_v58 = vsub.f32 1.5, %v410_v2 }
 0x38e   :  { %v412_v5 = vmul.f32 %v874_v50, %v411_v58 }
 0x390   :  { %v416_v63 = vsel %vm415_vm9, %v874_v50, %v412_v5 }
 0x391   :  { %v417_v31 = vmul.f32 %v416_v63, %v1180_v57  ;;  %v418_v53 = vmul.f32 %v416_v63, %v1183_v61  ;;  %v419_v3 = vmul.f32 %v416_v63, %v1174_v54  ;;  %v420_v1 = vmul.f32 %v416_v63, %v1177_v56 }
 0x393   :  { %v421_v27 = vmul.f32 %v417_v31, %v980_v51  ;;  %v422_v48 = vmul.f32 %v418_v53, %v980_v51  ;;  %v423_v59 = vmul.f32 %v419_v3, %v980_v51  ;;  %v424_v2 = vmul.f32 %v420_v1, %v980_v51 }
 0x395   :  { %v425_v38 = vadd.f32 %v421_v27, %v982_v55  ;;  %v426_v50 = vadd.f32 %v422_v48, %v982_v55  ;;  %v427_v57 = vadd.f32 %v423_v59, %v982_v55  ;;  %v428_v61 = vadd.f32 %v424_v2, %v982_v55 }
 0x397   :  { %v429_v58 = vmax.f32 %v425_v38, 0.0  ;;  %v430_v54 = vmax.f32 %v426_v50, 0.0  ;;  %v431_v5 = vmax.f32 %v427_v57, 0.0  ;;  %v432_v0 = vmax.f32 %v428_v61, 0.0 }
 0x399   :  { %v433_v56 = vperm.slane %v429_v58, 0  ;;  %v441_v63 = vperm.slane %v429_v58, 1  ;;  %v453_v31 = vperm.slane %v429_v58, 2  ;;  %v434_v53 = vperm.slane %v430_v54, 0 }
 0x39a   :  { %v442_v52 = vperm.slane %v430_v54, 1  ;;  %v454_v3 = vperm.slane %v430_v54, 2  ;;  %v465_v1 = vperm.slane %v429_v58, 3  ;;  %v466_v2 = vperm.slane %v430_v54, 3 }
 0x39b   :  { %v437_v51 = vmul.f32 %v433_v56, %v995_v14  ;;  %v445_v27 = vmul.f32 %v441_v63, %v993_v13  ;;  %v457_v48 = vmul.f32 %v453_v31, %v984_v60  ;;  %v438_v59 = vmul.f32 %v434_v53, %v995_v14 }
 0x39c   :  { %v446_v55 = vmul.f32 %v442_v52, %v993_v13  ;;  %v458_v50 = vmul.f32 %v454_v3, %v984_v60  ;;  %v435_v57 = vperm.slane %v431_v5, 0  ;;  %v443_v61 = vperm.slane %v431_v5, 1 }
 0x39d   :  { %v449_v38 = vadd.f32 %v445_v27, %v437_v51  ;;  %v455_v12 = vperm.slane %v431_v5, 2  ;;  %v436_v9 = vperm.slane %v432_v0, 0  ;;  %v444_v6 = vperm.slane %v432_v0, 1 }
 0x39e   :  { %v450_v46 = vadd.f32 %v446_v55, %v438_v59  ;;  %v469_v63 = vmul.f32 %v465_v1, %v991_v8  ;;  %v439_v58 = vmul.f32 %v435_v57, %v995_v14  ;;  %v447_v31 = vmul.f32 %v443_v61, %v993_v13  ;;  %v483_v61 = vld.sshfl [vmem:[#allocation1 + $0x8] sm:$0xff pattern:$0x75316420] }
 0x39f   :  { %v461_v56 = vadd.f32 %v457_v48, %v449_v38  ;;  %v470_v52 = vmul.f32 %v466_v2, %v991_v8  ;;  %v440_v54 = vmul.f32 %v436_v9, %v995_v14  ;;  %v448_v3 = vmul.f32 %v444_v6, %v993_v13 }
 0x3a0   :  { %v462_v53 = vadd.f32 %v458_v50, %v450_v46  ;;  %v451_v27 = vadd.f32 %v447_v31, %v439_v58  ;;  %v467_v59 = vperm.slane %v431_v5, 3  ;;  %v456_v55 = vperm.slane %v432_v0, 2 }
 0x3a1   :  { %v473_v51 = vadd.f32 %v469_v63, %v461_v56  ;;  %v459_v48 = vmul.f32 %v455_v12, %v984_v60  ;;  %v452_v1 = vadd.f32 %v448_v3, %v440_v54  ;;  %v468_v38 = vperm.slane %v432_v0, 3  ;;  %v1637_v56 = vld [vmem:[#allocation36_spill] sm:$0xff] }
 0x3a2   :  { %v474_v42 = vadd.f32 %v470_v52, %v462_v53  ;;  %v460_v46 = vmul.f32 %v456_v55, %v984_v60  ;;  %v471_v5 = vmul.f32 %v467_v59, %v991_v8 }
 0x3a3   :  { %v477_v57 = vadd.f32 %v473_v51, %v1005_v47  ;;  %v463_v14 = vadd.f32 %v459_v48, %v451_v27  ;;  %v472_v50 = vmul.f32 %v468_v38, %v991_v8 }
 0x3a4   :  { %v478_v2 = vadd.f32 %v474_v42, %v1005_v47  ;;  %v464_v13 = vadd.f32 %v460_v46, %v452_v1  ;;  %v1635_v42 = vld [vmem:[#allocation25_spill] sm:$0xff] }
 0x3a5   :  { %v492_v9 = vadd.f32 %v482_v43, %v477_v57  ;;  %v475_v12 = vadd.f32 %v471_v5, %v463_v14  ;;  %v1636_v43 = vld [vmem:[#allocation35_spill] sm:$0xff] }
 0x3a6   :  { %v493_v6 = vadd.f32 %v483_v61, %v478_v2  ;;  %v476_v0 = vadd.f32 %v472_v50, %v464_v13 }
 0x3a7   :  { %608 = vmatmul.f32.vlgmr.msra.gmra.mxu0 %v492_v9  ;;  %648 = vmatmul.f32.vlgmr.msra.gmra.mxu2 %v492_v9  ;;  %v479_v60 = vadd.f32 %v475_v12, %v1005_v47 }
 0x3a8   :  { %628 = vmatmul.f32.vlgmr.msra.gmra.mxu1 %v493_v6  ;;  %668 = vmatmul.f32.vlgmr.msra.gmra.mxu3 %v493_v6  ;;  %v480_v8 = vadd.f32 %v476_v0, %v1005_v47 }
 0x3a9   :  { %760 = vmatpush.msra.mxu0 %v1079_v17  ;;  %780 = vmatpush.msra.mxu1 %v1083_v7  ;;  %v486_v17 = vld.sshfl [vmem:[#allocation1 + $0x10] sm:$0xff pattern:$0x75316420]  ;;  %v487_v7 = vld.sshfl [vmem:[#allocation1 + $0x18] sm:$0xff pattern:$0x75316420] }
 0x3aa   :  { %800 = vmatpush.msra.mxu2 %v1291_v10  ;;  %820 = vmatpush.msra.mxu3 %v1293_v45  ;;  %v495_v47 = vadd.f32 %v487_v7, %v480_v8  ;;  %v1615_v45 = vld [vmem:[#allocation13_spill] sm:$0xff]  ;;  %v1616_v10 = vld [vmem:[#allocation14_spill] sm:$0xff] }
 0x3ab   :  { %761 = vmatpush.msra.mxu0 %v1091_v20  ;;  %781 = vmatpush.msra.mxu1 %v1093_v21  ;;  %v494_v20 = vadd.f32 %v486_v17, %v479_v60  ;;  %v1606_v21 = vld [vmem:[#allocation5_spill] sm:$0xff] }
 0x3ac   :  { %801 = vmatpush.msra.mxu2 %v1299_v49  ;;  %821 = vmatpush.msra.mxu3 %v1301_v4  ;;  %v1620_v49 = vld [vmem:[#allocation27_spill] sm:$0xff]  ;;  %v1622_v4 = vld [vmem:[#allocation18_spill] sm:$0xff] }
 0x3ad   :  { %762 = vmatpush.msra.mxu0 %v1101_v24  ;;  %782 = vmatpush.msra.mxu1 %v1103_v25  ;;  %v1607_v24 = vld [vmem:[#allocation26_spill] sm:$0xff] }
 0x3ae   :  { %802 = vmatpush.msra.mxu2 %v1307_v44  ;;  %822 = vmatpush.msra.mxu3 %v1309_v62  ;;  %v1608_v25 = vld [vmem:[#allocation6_spill] sm:$0xff]  ;;  %v1614_v44 = vld [vmem:[#allocation12_spill] sm:$0xff] }
 0x3af   :  { %763 = vmatpush.msra.mxu0 %v1113_v28  ;;  %783 = vmatpush.msra.mxu1 %v1115_v29  ;;  %v1609_v28 = vld [vmem:[#allocation7_spill] sm:$0xff]  ;;  %v1610_v29 = vld [vmem:[#allocation8_spill] sm:$0xff] }
 0x3b0   :  { %803 = vmatpush.msra.mxu2 %v1315_v11  ;;  %823 = vmatpush.msra.mxu3 %v1317_v15  ;;  %v1619_v11 = vld [vmem:[#allocation17_spill] sm:$0xff]  ;;  %v1621_v62 = vld [vmem:[#allocation28_spill] sm:$0xff]  ;;  %v1623_v15 = vld [vmem:[#allocation19_spill] sm:$0xff] }
 0x3b1   :  { %688 = vmatmul.f32.vlgmr.msrb.gmra.mxu0 %v492_v9  ;;  %708 = vmatmul.f32.vlgmr.msrb.gmra.mxu1 %v493_v6 }
 0x3b2   :  { %736 = vmatmul.f32.vlgmr.msrb.gmra.mxu2 %v494_v20  ;;  %756 = vmatmul.f32.vlgmr.msrb.gmra.mxu3 %v495_v47 }
 0x3b3   :  { %764 = vmatpush.msra.mxu0 %v1125_v32  ;;  %784 = vmatpush.msra.mxu1 %v1127_v33  ;;  %v1611_v32 = vld [vmem:[#allocation9_spill] sm:$0xff]  ;;  %v1612_v33 = vld [vmem:[#allocation10_spill] sm:$0xff] }
 0x3b4   :  { %804 = vmatpush.msra.mxu2 %v1323_v16  ;;  %824 = vmatpush.msra.mxu3 %v1325_v18  ;;  %v1624_v16 = vld [vmem:[#allocation29_spill] sm:$0xff]  ;;  %v1625_v18 = vld [vmem:[#allocation30_spill] sm:$0xff] }
 0x3b5   :  { %765 = vmatpush.msra.mxu0 %v1137_v36  ;;  %785 = vmatpush.msra.mxu1 %v1606_v21  ;;  %v1613_v36 = vld [vmem:[#allocation11_spill] sm:$0xff] }
 0x3b6   :  { %805 = vmatpush.msra.mxu2 %v1331_v19  ;;  %825 = vmatpush.msra.mxu3 %v1607_v24  ;;  %v1626_v19 = vld [vmem:[#allocation20_spill] sm:$0xff] }
 0x3b7   :  { %766 = vmatpush.msra.mxu0 %v1608_v25  ;;  %786 = vmatpush.msra.mxu1 %v1609_v28 }
 0x3b8   :  { %806 = vmatpush.msra.mxu2 %v1339_v23  ;;  %826 = vmatpush.msra.mxu3 %v1341_v26  ;;  %v1627_v23 = vld [vmem:[#allocation21_spill] sm:$0xff]  ;;  %v1628_v26 = vld [vmem:[#allocation31_spill] sm:$0xff] }
 0x3b9   :  { %767 = vmatpush.msra.mxu0 %v1610_v29  ;;  %787 = vmatpush.msra.mxu1 %v1611_v32 }
 0x3ba   :  { %807 = vmatpush.msra.mxu2 %v1345_v40  ;;  %827 = vmatpush.msra.mxu3 %v1347_v37  ;;  %v1617_v40 = vld [vmem:[#allocation15_spill] sm:$0xff]  ;;  %v1618_v37 = vld [vmem:[#allocation16_spill] sm:$0xff] }
 0x3bb   :  { %768 = vmatpush.msra.mxu0 %v1612_v33  ;;  %788 = vmatpush.msra.mxu1 %v1613_v36 }
 0x3bc   :  { %808 = vmatpush.msra.mxu2 %v1355_v34  ;;  %828 = vmatpush.msra.mxu3 %v1357_v35  ;;  %v1629_v34 = vld [vmem:[#allocation32_spill] sm:$0xff]  ;;  %v1630_v35 = vld [vmem:[#allocation22_spill] sm:$0xff] }
 0x3bd   :  { %769 = vmatpush.msra.mxu0 %v1614_v44  ;;  %789 = vmatpush.msra.mxu1 %v1615_v45 }
 0x3be   :  { %809 = vmatpush.msra.mxu2 %v1363_v41  ;;  %829 = vmatpush.msra.mxu3 %v1365_v30  ;;  %v1631_v41 = vld [vmem:[#allocation23_spill] sm:$0xff]  ;;  %v1632_v30 = vld [vmem:[#allocation33_spill] sm:$0xff] }
 0x3bf   :  { %770 = vmatpush.msra.mxu0 %v1616_v10  ;;  %790 = vmatpush.msra.mxu1 %v1617_v40 }
 0x3c0   :  { %810 = vmatpush.msra.mxu2 %v1371_v39  ;;  %830 = vmatpush.msra.mxu3 %v1373_v22  ;;  %v1633_v39 = vld [vmem:[#allocation34_spill] sm:$0xff]  ;;  %v1634_v22 = vld [vmem:[#allocation24_spill] sm:$0xff] }
 0x3c1   :  { %771 = vmatpush.msra.mxu0 %v1618_v37  ;;  %791 = vmatpush.msra.mxu1 %v1619_v11 }
 0x3c2   :  { %811 = vmatpush.msra.mxu2 %v1620_v49  ;;  %831 = vmatpush.msra.mxu3 %v1621_v62 }
 0x3c3   :  { %772 = vmatpush.msra.mxu0 %v1622_v4  ;;  %792 = vmatpush.msra.mxu1 %v1623_v15 }
 0x3c4   :  { %812 = vmatpush.msra.mxu2 %v1624_v16  ;;  %832 = vmatpush.msra.mxu3 %v1625_v18 }
 0x3c5   :  { %773 = vmatpush.msra.mxu0 %v1626_v19  ;;  %793 = vmatpush.msra.mxu1 %v1627_v23 }
 0x3c6   :  { %813 = vmatpush.msra.mxu2 %v1628_v26  ;;  %833 = vmatpush.msra.mxu3 %v1629_v34 }
 0x3c7   :  { %774 = vmatpush.msra.mxu0 %v1630_v35  ;;  %794 = vmatpush.msra.mxu1 %v1631_v41 }
 0x3c8   :  { %814 = vmatpush.msra.mxu2 %v1632_v30  ;;  %834 = vmatpush.msra.mxu3 %v1633_v39 }
 0x3c9   :  { %775 = vmatpush.msra.mxu0 %v1634_v22  ;;  %795 = vmatpush.msra.mxu1 %v1635_v42 }
 0x3ca   :  { %815 = vmatpush.msra.mxu2 %v1636_v43  ;;  %835 = vmatpush.msra.mxu3 %v1637_v56 }
 0x3cb   :  { %776 = vmatmul.f32.vlgmr.msra.gmra.mxu0 %v494_v20  ;;  %796 = vmatmul.f32.vlgmr.msra.gmra.mxu1 %v495_v47 }
 0x3cc   :  { %816 = vmatmul.f32.vlgmr.msra.gmra.mxu2 %v494_v20  ;;  %836 = vmatmul.f32.vlgmr.msra.gmra.mxu3 %v495_v47 }
 0x424   :  { %v609_v63 = vpop.f32.mrf.mxu0 }
 0x425   :  { %v629_v58 = vpop.f32.mrf.mxu1 }
 0x426   :  { %v630_v54 = vadd.f32 %v629_v58, %v609_v63 }
 0x42a   :  { %v649_v31 = vpop.f32.mrf.mxu2 }
 0x42b   :  { %v669_v53 = vpop.f32.mrf.mxu3 }
 0x42c   :  { %v670_v52 = vadd.f32 %v669_v53, %v649_v31 }
 0x42e   :  { %v714_v3 = vrot.slane %v670_v52, 4  ;;  %v689_v51 = vpop.f32.mrf.mxu0  ;;  %v709_v27 = vpop.f32.mrf.mxu1 }
 0x42f   :  { %v710_v59 = vadd.f32 %v709_v27, %v689_v51 }
 0x430   :  { %v715_v55 = vsel %vm58_vm0, %v630_v54, %v714_v3 }
 0x431   :  { %717 = vst [vmem:[%s1541_s6] sm:$0xff] %v715_v55 }
 0x432   :  { %719 = vst.msk [vmem:[%s1541_s6 + $0x8] sm:$0xf] %vm718_vm10, %v710_v59 }
 0x435   :  { %v737_v48 = vpop.f32.mrf.mxu2  ;;  %v757_v1 = vpop.f32.mrf.mxu3 }
 0x436   :  { %v758_v46 = vadd.f32 %v757_v1, %v737_v48 }
 0x448   :  { %v777_v38 = vpop.f32.mrf.mxu0  ;;  %v797_v57 = vpop.f32.mrf.mxu1 }
 0x449   :  { %v798_v61 = vadd.f32 %v797_v57, %v777_v38 }
 0x44b   :  { %v842_v2 = vrot.slane %v798_v61, 4 }
 0x44d   :  { %v843_v14 = vsel %vm58_vm0, %v758_v46, %v842_v2 }
 0x44e   :  { %853 = vst [vmem:[%s1541_s6 + $0xc] sm:$0xff] %v843_v14 }
 0x44f   :  { %v817_v9 = vpop.f32.mrf.mxu2  ;;  %v837_v13 = vpop.f32.mrf.mxu3 }
 0x450   :  { %v838_v6 = vadd.f32 %v837_v13, %v817_v9 }
 0x452   :  { %854 = vst.msk [vmem:[%s1541_s6 + $0x14] sm:$0xf] %vm718_vm10, %v838_v6 }
 0x453   :  { %852 = vsyncpa [#allocation3], 1 }

</bundles_post_ra>
